<compile_context>
chip_gen: v7x
topology: tpu7x:2x2x1
jax: 0.10.0
libtpu: 0.0.40
codegen_flags: <defaults>
</compile_context>

<pallas_src>
import functools
from collections import namedtuple

import jax
import jax.numpy as jnp
from jax.experimental import pallas as pl
from jax.experimental.pallas import tpu as pltpu

Vocab = namedtuple("Vocab", ["pad_idx", "empty_idx", "unk_idx"])


def _round_up(x, m):
    return (x + m - 1) // m * m


def _device_kind():
    try:
        return jax.devices()[0].device_kind.lower()
    except Exception:
        return ""


def _vmem_limit_bytes():
    # 128-MiB-VMEM parts (v4/v5e/v6e) get 96 MiB; v7x (64 MiB/TC) / unknown get 48 MiB.
    kind = _device_kind()
    if any(t in kind for t in ("v4", "v5", "v6")):
        return 96 * 1024 * 1024
    return 48 * 1024 * 1024


def _default_tile_r():
    kind = _device_kind()
    if any(t in kind for t in ("v4", "v5", "v6")):
        return 512        # big row tiles amortize the ~0.35us/step overhead
    return 256            # v7x: tighter VMEM budget


def _choose_row_tile(R, tile_r):
    """MXU-aligned (multiple-of-128) row tile; for small R shrink (16-aligned,
    bf16 sublane packing) so the ("parallel",) grid keeps >= 2 tiles (v7x 2 TCs)."""
    tr = _round_up(min(tile_r, max(R, 1)), 128)
    if _round_up(R, tr) // tr < 2:
        half = _round_up((R + 1) // 2, 128 if R >= 256 else 16)
        tr = min(tr, max(half, 16))
    return tr


# ---------------------------------------------------------------------------
# Fused kernel: 2 concatenated-head matmuls + type ensembling + per-row rank
# counts.  Output lanes of the (TILE_R, 128) int32 block, per row r:
#   0: #(types_ens > types_ens[y_t1])   rank of y_t1 in ensembled types
#   1: #(types1   > types1[y_t1])       rank of y_t1 in model-1 types
#   2: #(types2   > types2[y_t2])       rank of y_t2 in model-2 types
#   3: #(vals1    > vals1[y_v1])        rank of y_v1 in model-1 values
#   4: #(vals2    > vals2[y_v2])        rank of y_v2 in model-2 values
#   5: #(vals2    > vals1[y_v1])        cross term: concat-space rank of y_v1
#   6: #(vals1    > vals2[y_v2])        cross term: concat-space rank of y_v2
#   7..127: zeros (keeps the store a full, unmasked 128-lane write)
# ---------------------------------------------------------------------------
def _fused_kernel(y_ref, e1_ref, e2_ref, w1_ref, w2_ref, cnt_ref, *,
                  nt, nv1, nv2, ntp, nv1p, nv2p):
    tr = e1_ref.shape[0]
    neg = jnp.float32(-jnp.inf)

    # One MXU matmul per model over the concatenated [types | values] head,
    # bf16 inputs, f32 accumulation.
    l1 = jnp.dot(e1_ref[...], w1_ref[...], preferred_element_type=jnp.float32)
    l2 = jnp.dot(e2_ref[...], w2_ref[...], preferred_element_type=jnp.float32)

    # Slices land on 128-aligned column boundaries (heads padded in wrapper).
    t1 = l1[:, :ntp]
    v1 = l1[:, ntp:]
    t2 = l2[:, :ntp]
    v2 = l2[:, ntp:]

    # Hoisted / de-duplicated column iotas (JAX does not CSE broadcast_in_dim).
    col_t = jax.lax.broadcasted_iota(jnp.int32, (tr, ntp), 1)
    col_v1 = col_t if nv1p == ntp else jax.lax.broadcasted_iota(jnp.int32, (tr, nv1p), 1)
    if nv2p == ntp:
        col_v2 = col_t
    elif nv2p == nv1p:
        col_v2 = col_v1
    else:
        col_v2 = jax.lax.broadcasted_iota(jnp.int32, (tr, nv2p), 1)

    # Mask vocab-pad columns to -inf (static; emitted only if a head was padded).
    if ntp != nt:
        t1 = jnp.where(col_t < nt, t1, neg)
        t2 = jnp.where(col_t < nt, t2, neg)
    if nv1p != nv1:
        v1 = jnp.where(col_v1 < nv1, v1, neg)
    if nv2p != nv2:
        v2 = jnp.where(col_v2 < nv2, v2, neg)

    ys = y_ref[...]                              # (TR, 4) int32
    y_t1 = ys[:, 0:1]
    y_t2 = ys[:, 1:2]
    y_v1 = ys[:, 2:3]
    y_v2 = ys[:, 3:4]

    def target_logit(logits, col, y):
        # Logits tile is already in vregs; exact extraction of logits[r, y[r]].
        return jnp.max(jnp.where(col == y, logits, neg), axis=-1, keepdims=True)

    def count_gt(logits, tgt):
        return jnp.sum((logits > tgt).astype(jnp.int32), axis=-1, keepdims=True)

    # ---- types group first: t_sum is short-lived (freed before values work) ----
    m_t1 = col_t == y_t1                         # reused for model-1 & ensembled types
    tgt_t1 = jnp.max(jnp.where(m_t1, t1, neg), axis=-1, keepdims=True)
    c_t1 = count_gt(t1, tgt_t1)
    tgt_t2 = target_logit(t2, col_t, y_t2)
    c_t2 = count_gt(t2, tgt_t2)
    t_sum = t1 + t2                              # rank((a+b)/2) == rank(a+b): drop *0.5
    tgt_ens = jnp.max(jnp.where(m_t1, t_sum, neg), axis=-1, keepdims=True)
    c_ens = count_gt(t_sum, tgt_ens)

    # ---- values group (v1/v2 co-resident only for the concat cross terms) ----
    tgt_v1 = target_logit(v1, col_v1, y_v1)
    tgt_v2 = target_logit(v2, col_v2, y_v2)
    c_v1 = count_gt(v1, tgt_v1)
    c_v1_gt2 = count_gt(v1, tgt_v2)
    c_v2 = count_gt(v2, tgt_v2)
    c_v2_gt1 = count_gt(v2, tgt_v1)

    lane = col_t if ntp == 128 else jax.lax.broadcasted_iota(jnp.int32, (tr, 128), 1)
    out = jnp.where(lane == 0, c_ens, 0)
    out = jnp.where(lane == 1, c_t1, out)
    out = jnp.where(lane == 2, c_t2, out)
    out = jnp.where(lane == 3, c_v1, out)
    out = jnp.where(lane == 4, c_v2, out)
    out = jnp.where(lane == 5, c_v2_gt1, out)
    out = jnp.where(lane == 6, c_v1_gt2, out)
    cnt_ref[...] = out


def ensemble_ranks_fused(emb1, emb2, wt1, wt2, wv1, wv2, y_all, *, tile_r=None):
    """Returns an (R, 128) int32 rank-count slab (lanes documented above)."""
    R, H = emb1.shape
    Nt, Nv1, Nv2 = wt1.shape[1], wv1.shape[1], wv2.shape[1]
    Ntp, Nv1p, Nv2p = (_round_up(n, 128) for n in (Nt, Nv1, Nv2))

    def pad_cols(w, n):
        return w if w.shape[1] == n else jnp.pad(w, ((0, 0), (0, n - w.shape[1])))

    # One concatenated [types | values] head per model -> one MXU matmul per
    # model per row tile; per-segment 128-padding keeps in-kernel slices aligned.
    w1 = jnp.concatenate([pad_cols(wt1, Ntp), pad_cols(wv1, Nv1p)], axis=1)
    w2 = jnp.concatenate([pad_cols(wt2, Ntp), pad_cols(wv2, Nv2p)], axis=1)

    if tile_r is None:
        tile_r = _default_tile_r()
    tr = _choose_row_tile(R, tile_r)
    r_pad = _round_up(R, tr)
    if r_pad != R:
        pad = r_pad - R
        emb1 = jnp.pad(emb1, ((0, pad), (0, 0)))
        emb2 = jnp.pad(emb2, ((0, pad), (0, 0)))
        y_all = jnp.pad(y_all, ((0, pad), (0, 0)))

    kernel = functools.partial(_fused_kernel, nt=Nt, nv1=Nv1, nv2=Nv2,
                               ntp=Ntp, nv1p=Nv1p, nv2p=Nv2p)

    def row_spec(shape):
        return pl.BlockSpec(shape, lambda i: (i, 0))

    def weight_spec(shape, single_buffer):
        # Constant block index across the row grid: with single buffering the
        # head weights occupy one VMEM copy instead of a double buffer.
        if single_buffer:
            return pl.BlockSpec(shape, lambda i: (0, 0),
                                pipeline_mode=pl.Buffered(1))
        return pl.BlockSpec(shape, lambda i: (0, 0))

    # NOTE: for very large vocabularies (esp. on v7x's 64 MiB VMEM) the vocab
    # axis would also be tiled with a target-then-count scheme; at these head
    # widths it is unnecessary.
    def run(single_buffer_weights):
        return pl.pallas_call(
            kernel,
            out_shape=jax.ShapeDtypeStruct((r_pad, 128), jnp.int32),
            grid=(r_pad // tr,),
            in_specs=[
                row_spec((tr, 4)),        # packed targets [y_t1, y_t2, y_v1, y_v2]
                row_spec((tr, H)),        # emb1 (bf16)
                row_spec((tr, H)),        # emb2 (bf16)
                weight_spec((H, w1.shape[1]), single_buffer_weights),
                weight_spec((H, w2.shape[1]), single_buffer_weights),
            ],
            out_specs=row_spec((tr, 128)),
            compiler_params=pltpu.CompilerParams(
                dimension_semantics=("parallel",),
                vmem_limit_bytes=_vmem_limit_bytes()),
        )(y_all, emb1, emb2, w1, w2)

    if hasattr(pl, "Buffered"):
        try:
            counts = run(True)
        except Exception:
            counts = run(False)       # fallback: default double-buffered weights
    else:
        counts = run(False)
    return counts[:R]


# ---------------------------------------------------------------------------
# JAX glue replicating mrr_true / mrr / _mrr / extract_max with masks
# (operates only on (R,)-sized rank vectors -- the heavy work is in-kernel).
# ---------------------------------------------------------------------------
def valid_mask(y_2d, ext, pad_idx, empty_idx):
    bs, L = y_2d.shape
    ext_ids = jnp.arange(L, dtype=jnp.int32)[None, :]
    m = ext_ids >= ext[:, None]
    m &= y_2d != pad_idx
    m &= y_2d != empty_idx
    return m.reshape(-1)


def _mrr_single(rank, y_2d, ext, vocab):
    y_flat = y_2d.reshape(-1)
    valid = valid_mask(y_2d, ext, vocab.pad_idx, vocab.empty_idx)
    hit = (rank < 10) & (y_flat != vocab.unk_idx) & valid
    rr = jnp.where(hit, 1.0 / (rank.astype(jnp.float32) + 1.0), 0.0)
    metric = jnp.sum(rr)
    ln = jnp.where(jnp.sum(hit) > 0, jnp.sum(valid.astype(jnp.int32)), 0)
    return metric, ln


def _mrr_ensemble(rank1, rank2, y1_2d, y2_2d, ext, vocab1, vocab2, thres):
    y1 = y1_2d.reshape(-1)
    y2 = y2_2d.reshape(-1)
    valid = valid_mask(y1_2d, ext, vocab1.pad_idx, vocab1.empty_idx)
    hit1 = (rank1 < 10) & (y1 != vocab1.unk_idx) & valid
    # Reference compares the *shifted* target (thres + y2) against
    # vocab2.unk_idx, which is effectively never true; reproduced faithfully.
    hit2 = (rank2 < 10) & ((y2 + thres) != vocab2.unk_idx) & valid
    best = jnp.where(hit1 & hit2, jnp.minimum(rank1, rank2),
                     jnp.where(hit1, rank1, rank2))
    rr = jnp.where(hit1 | hit2, 1.0 / (best.astype(jnp.float32) + 1.0), 0.0)
    metric = jnp.sum(rr)
    ln = jnp.where(jnp.sum(hit1 | hit2) > 0, jnp.sum(valid.astype(jnp.int32)), 0)
    return metric, ln


# ---------------------------------------------------------------------------
# EnsembledModel.forward
# ---------------------------------------------------------------------------
def ensembled_model_forward(xs, params, vocabs, *, tile_r=None):
    p1, p2 = params
    (v1_types, v1_values), (v2_types, v2_values) = vocabs

    x1, x2 = xs
    # xs[0]['extended'] == xs[1]['extended'] is asserted in the reference.
    ext = x1["extended"]

    bs, L = x1["input_seq"].shape
    R = bs * L

    # Synthetic sub-model trunk: token + positional embedding, gathered and
    # added directly in bf16 so only a single (R, H) bf16 slab per model hits
    # HBM (no f32 write + separate bf16 rewrite).
    # TODO(synk): the real black-box sub-models also consume rel=x['rel_mask'];
    # their internals are unspecified, so rel_mask is accepted but unused.
    def trunk(p, x):
        emb = p["emb"].astype(jnp.bfloat16)[x["input_seq"]]
        pos = p["pos"].astype(jnp.bfloat16)[x["positions"]]
        return (emb + pos).reshape(R, -1)

    emb1 = trunk(p1, x1)
    emb2 = trunk(p2, x2)

    ty1 = x1["target_seq"]["types"]
    ty2 = x2["target_seq"]["types"]
    tv1 = x1["target_seq"]["values"]
    tv2 = x2["target_seq"]["values"]

    y_all = jnp.stack(
        [ty1.reshape(-1), ty2.reshape(-1), tv1.reshape(-1), tv2.reshape(-1)],
        axis=-1).astype(jnp.int32)                      # (R, 4)

    counts = ensemble_ranks_fused(
        emb1, emb2,
        p1["w_types"].astype(jnp.bfloat16), p2["w_types"].astype(jnp.bfloat16),
        p1["w_values"].astype(jnp.bfloat16), p2["w_values"].astype(jnp.bfloat16),
        y_all, tile_r=tile_r)

    rank_ens_t = counts[:, 0]
    rank_t1 = counts[:, 1]
    rank_t2 = counts[:, 2]
    rank_v1 = counts[:, 3]
    rank_v2 = counts[:, 4]
    rank_v1_cat = counts[:, 3] + counts[:, 5]   # rank of y_v1 in [vals1 | vals2]
    rank_v2_cat = counts[:, 6] + counts[:, 4]   # rank of thres+y_v2 in the concat

    thres = p1["w_values"].shape[1]

    mrr_types = _mrr_single(rank_ens_t, ty1, ext, v1_types)
    mrr_single_types1 = _mrr_single(rank_t1, ty1, ext, v1_types)
    mrr_single_types2 = _mrr_single(rank_t2, ty2, ext, v2_types)
    mrr_values = _mrr_ensemble(rank_v1_cat, rank_v2_cat, tv1, tv2, ext,
                               v1_values, v2_values, thres)
    mrr_single_values1 = _mrr_single(rank_v1, tv1, ext, v1_values)
    mrr_single_values2 = _mrr_single(rank_v2, tv2, ext, v2_values)

    return (mrr_types, mrr_values,
            (mrr_single_types1, mrr_single_types2),
            (mrr_single_values1, mrr_single_values2))


# ---------------------------------------------------------------------------
if __name__ == "__main__":
    key = jax.random.PRNGKey(0)
    bs, L, H = 2, 16, 32
    V_in = 50
    Nt, Nv1, Nv2 = 128, 128, 256     # model 2 has a different values vocab

    ks = jax.random.split(key, 16)

    # deterministic synthetic parameters for the two sub-models
    p1 = dict(
        emb=0.1 * jax.random.normal(ks[0], (V_in, H), jnp.float32),
        pos=0.1 * jax.random.normal(ks[1], (L, H), jnp.float32),
        w_types=0.1 * jax.random.normal(ks[2], (H, Nt), jnp.float32),
        w_values=0.1 * jax.random.normal(ks[3], (H, Nv1), jnp.float32),
    )
    p2 = dict(
        emb=0.1 * jax.random.normal(ks[4], (V_in, H), jnp.float32),
        pos=0.1 * jax.random.normal(ks[5], (L, H), jnp.float32),
        w_types=0.1 * jax.random.normal(ks[6], (H, Nt), jnp.float32),
        w_values=0.1 * jax.random.normal(ks[7], (H, Nv2), jnp.float32),
    )

    vocabs = (
        (Vocab(pad_idx=0, empty_idx=1, unk_idx=2),   # model 1 types vocab
         Vocab(pad_idx=0, empty_idx=1, unk_idx=2)),  # model 1 values vocab
        (Vocab(pad_idx=0, empty_idx=1, unk_idx=2),   # model 2 types vocab
         Vocab(pad_idx=0, empty_idx=1, unk_idx=2)),  # model 2 values vocab
    )

    positions = jnp.tile(jnp.arange(L, dtype=jnp.int32)[None, :], (bs, 1))
    ext = jax.random.randint(ks[8], (bs,), 0, L // 2, jnp.int32)

    x1 = dict(
        input_seq=jax.random.randint(ks[9], (bs, L), 0, V_in, jnp.int32),
        rel_mask=jax.random.normal(ks[10], (bs, L, L), jnp.float32),
        positions=positions,
        extended=ext,
        target_seq=dict(
            types=jax.random.randint(ks[11], (bs, L), 0, Nt, jnp.int32),
            values=jax.random.randint(ks[12], (bs, L), 0, Nv1, jnp.int32),
        ),
    )
    x2 = dict(
        input_seq=jax.random.randint(ks[13], (bs, L), 0, V_in, jnp.int32),
        rel_mask=jax.random.normal(ks[14], (bs, L, L), jnp.float32),
        positions=positions,
        extended=ext,  # must equal x1['extended'] (asserted in reference)
        target_seq=dict(
            types=x1["target_seq"]["types"],  # ensembled types share targets
            values=jax.random.randint(ks[15], (bs, L), 0, Nv2, jnp.int32),
        ),
    )

    # Auto tile selection: at this tiny demo shape (R = 32) the row tile shrinks
    # to 16 -> a 2-tile "parallel" grid (exercises the pipelined path); real
    # shapes use the chip-aware 256/512-row default.
    out = ensembled_model_forward((x1, x2), (p1, p2), vocabs)
    out = jax.block_until_ready(out)

    (mrr_types, mrr_values, (st1, st2), (sv1, sv2)) = out
    assert jnp.isfinite(mrr_types[0]) and jnp.isfinite(mrr_values[0])
    assert all(jnp.isfinite(m[0]) for m in (st1, st2, sv1, sv2))
    print("KERNEL_OK")
</pallas_src>

<mosaic_0001>
module attributes {stable_mosaic.version = 11 : i64} {
  func.func @_fused_kernel(%arg0: i32, %arg1: memref<16x4xi32, #tpu.memory_space<vmem>>, %arg2: memref<16x32xbf16, #tpu.memory_space<vmem>>, %arg3: memref<16x32xbf16, #tpu.memory_space<vmem>>, %arg4: memref<32x256xbf16, #tpu.memory_space<vmem>>, %arg5: memref<32x384xbf16, #tpu.memory_space<vmem>>, %arg6: memref<16x128xi32, #tpu.memory_space<vmem>>) attributes {dimension_semantics = [#tpu.dimension_semantics<parallel>], iteration_bounds = array<i64: 2>, scalar_prefetch = 0 : i64, scratch_operands = 0 : i64, tpu.core_type = #tpu.core_type<tc>, window_params = [{transform_indices = @transform_0, window_bounds = array<i64: 16, 4>}, {transform_indices = @transform_1, window_bounds = array<i64: 16, 32>}, {transform_indices = @transform_2, window_bounds = array<i64: 16, 32>}, {pipeline_mode = #tpu.pipeline_mode<synchronous>, transform_indices = @transform_3, window_bounds = array<i64: 32, 256>}, {pipeline_mode = #tpu.pipeline_mode<synchronous>, transform_indices = @transform_4, window_bounds = array<i64: 32, 384>}, {transform_indices = @transform_5, window_bounds = array<i64: 16, 128>}]} {
    %c0 = arith.constant 0 : index
    %c0_0 = arith.constant 0 : index
    %0 = vector.load %arg2[%c0, %c0_0] : memref<16x32xbf16, #tpu.memory_space<vmem>>, vector<16x32xbf16>
    %c0_1 = arith.constant 0 : index
    %c0_2 = arith.constant 0 : index
    %1 = vector.load %arg4[%c0_1, %c0_2] : memref<32x256xbf16, #tpu.memory_space<vmem>>, vector<32x256xbf16>
    %cst = arith.constant dense<0.000000e+00> : vector<16x256xf32>
    %2 = tpu.matmul %0, %1, %cst {dimension_numbers = #tpu.dot_dimension_numbers<[1], [0], [0], [1], [0, 0, 1, 1], [], []>} : vector<16x32xbf16>, vector<32x256xbf16>, vector<16x256xf32> -> vector<16x256xf32>
    %c0_3 = arith.constant 0 : index
    %c0_4 = arith.constant 0 : index
    %3 = vector.load %arg3[%c0_3, %c0_4] : memref<16x32xbf16, #tpu.memory_space<vmem>>, vector<16x32xbf16>
    %c0_5 = arith.constant 0 : index
    %c0_6 = arith.constant 0 : index
    %4 = vector.load %arg5[%c0_5, %c0_6] : memref<32x384xbf16, #tpu.memory_space<vmem>>, vector<32x384xbf16>
    %cst_7 = arith.constant dense<0.000000e+00> : vector<16x384xf32>
    %5 = tpu.matmul %3, %4, %cst_7 {dimension_numbers = #tpu.dot_dimension_numbers<[1], [0], [0], [1], [0, 0, 1, 1], [], []>} : vector<16x32xbf16>, vector<32x384xbf16>, vector<16x384xf32> -> vector<16x384xf32>
    %6 = vector.extract_strided_slice %2 {offsets = [0, 0], sizes = [16, 128], strides = [1, 1]} : vector<16x256xf32> to vector<16x128xf32>
    %7 = vector.extract_strided_slice %2 {offsets = [0, 128], sizes = [16, 128], strides = [1, 1]} : vector<16x256xf32> to vector<16x128xf32>
    %8 = vector.extract_strided_slice %5 {offsets = [0, 0], sizes = [16, 128], strides = [1, 1]} : vector<16x384xf32> to vector<16x128xf32>
    %9 = vector.extract_strided_slice %5 {offsets = [0, 128], sizes = [16, 256], strides = [1, 1]} : vector<16x384xf32> to vector<16x256xf32>
    %10 = tpu.iota {dimensions = array<i32: 1>} : vector<16x128xi32>
    %11 = tpu.iota {dimensions = array<i32: 1>} : vector<16x256xi32>
    %c0_8 = arith.constant 0 : index
    %c0_9 = arith.constant 0 : index
    %12 = vector.load %arg1[%c0_8, %c0_9] : memref<16x4xi32, #tpu.memory_space<vmem>>, vector<16x4xi32>
    %13 = vector.extract_strided_slice %12 {offsets = [0, 0], sizes = [16, 1], strides = [1, 1]} : vector<16x4xi32> to vector<16x1xi32>
    %14 = vector.extract_strided_slice %12 {offsets = [0, 1], sizes = [16, 1], strides = [1, 1]} : vector<16x4xi32> to vector<16x1xi32>
    %15 = vector.extract_strided_slice %12 {offsets = [0, 2], sizes = [16, 1], strides = [1, 1]} : vector<16x4xi32> to vector<16x1xi32>
    %16 = vector.extract_strided_slice %12 {offsets = [0, 3], sizes = [16, 1], strides = [1, 1]} : vector<16x4xi32> to vector<16x1xi32>
    %17 = vector.broadcast %13 : vector<16x1xi32> to vector<16x128xi32>
    %18 = arith.cmpi eq, %10, %17 : vector<16x128xi32>
    %cst_10 = arith.constant 0xFF800000 : f32
    %19 = vector.broadcast %cst_10 : f32 to vector<16x128xf32>
    %20 = arith.select %18, %6, %19 : vector<16x128xi1>, vector<16x128xf32>
    %cst_11 = arith.constant dense<0xFF800000> : vector<16xf32>
    %21 = vector.multi_reduction <maximumf>, %20, %cst_11 [1] : vector<16x128xf32> to vector<16xf32>
    %22 = vector.shape_cast %21 : vector<16xf32> to vector<16x1xf32>
    %23 = vector.broadcast %22 : vector<16x1xf32> to vector<16x128xf32>
    %24 = arith.cmpf ogt, %6, %23 : vector<16x128xf32>
    %25 = arith.extui %24 : vector<16x128xi1> to vector<16x128xi32>
    %cst_12 = arith.constant dense<0> : vector<16xi32>
    %26 = vector.multi_reduction <add>, %25, %cst_12 [1] : vector<16x128xi32> to vector<16xi32>
    %27 = vector.shape_cast %26 : vector<16xi32> to vector<16x1xi32>
    %28 = vector.broadcast %14 : vector<16x1xi32> to vector<16x128xi32>
    %29 = arith.cmpi eq, %10, %28 : vector<16x128xi32>
    %cst_13 = arith.constant 0xFF800000 : f32
    %30 = vector.broadcast %cst_13 : f32 to vector<16x128xf32>
    %31 = arith.select %29, %8, %30 : vector<16x128xi1>, vector<16x128xf32>
    %cst_14 = arith.constant dense<0xFF800000> : vector<16xf32>
    %32 = vector.multi_reduction <maximumf>, %31, %cst_14 [1] : vector<16x128xf32> to vector<16xf32>
    %33 = vector.shape_cast %32 : vector<16xf32> to vector<16x1xf32>
    %34 = vector.broadcast %33 : vector<16x1xf32> to vector<16x128xf32>
    %35 = arith.cmpf ogt, %8, %34 : vector<16x128xf32>
    %36 = arith.extui %35 : vector<16x128xi1> to vector<16x128xi32>
    %cst_15 = arith.constant dense<0> : vector<16xi32>
    %37 = vector.multi_reduction <add>, %36, %cst_15 [1] : vector<16x128xi32> to vector<16xi32>
    %38 = vector.shape_cast %37 : vector<16xi32> to vector<16x1xi32>
    %39 = arith.addf %6, %8 : vector<16x128xf32>
    %cst_16 = arith.constant 0xFF800000 : f32
    %40 = vector.broadcast %cst_16 : f32 to vector<16x128xf32>
    %41 = arith.select %18, %39, %40 : vector<16x128xi1>, vector<16x128xf32>
    %cst_17 = arith.constant dense<0xFF800000> : vector<16xf32>
    %42 = vector.multi_reduction <maximumf>, %41, %cst_17 [1] : vector<16x128xf32> to vector<16xf32>
    %43 = vector.shape_cast %42 : vector<16xf32> to vector<16x1xf32>
    %44 = vector.broadcast %43 : vector<16x1xf32> to vector<16x128xf32>
    %45 = arith.cmpf ogt, %39, %44 : vector<16x128xf32>
    %46 = arith.extui %45 : vector<16x128xi1> to vector<16x128xi32>
    %cst_18 = arith.constant dense<0> : vector<16xi32>
    %47 = vector.multi_reduction <add>, %46, %cst_18 [1] : vector<16x128xi32> to vector<16xi32>
    %48 = vector.shape_cast %47 : vector<16xi32> to vector<16x1xi32>
    %49 = vector.broadcast %15 : vector<16x1xi32> to vector<16x128xi32>
    %50 = arith.cmpi eq, %10, %49 : vector<16x128xi32>
    %cst_19 = arith.constant 0xFF800000 : f32
    %51 = vector.broadcast %cst_19 : f32 to vector<16x128xf32>
    %52 = arith.select %50, %7, %51 : vector<16x128xi1>, vector<16x128xf32>
    %cst_20 = arith.constant dense<0xFF800000> : vector<16xf32>
    %53 = vector.multi_reduction <maximumf>, %52, %cst_20 [1] : vector<16x128xf32> to vector<16xf32>
    %54 = vector.shape_cast %53 : vector<16xf32> to vector<16x1xf32>
    %55 = vector.broadcast %16 : vector<16x1xi32> to vector<16x256xi32>
    %56 = arith.cmpi eq, %11, %55 : vector<16x256xi32>
    %cst_21 = arith.constant 0xFF800000 : f32
    %57 = vector.broadcast %cst_21 : f32 to vector<16x256xf32>
    %58 = arith.select %56, %9, %57 : vector<16x256xi1>, vector<16x256xf32>
    %cst_22 = arith.constant dense<0xFF800000> : vector<16xf32>
    %59 = vector.multi_reduction <maximumf>, %58, %cst_22 [1] : vector<16x256xf32> to vector<16xf32>
    %60 = vector.shape_cast %59 : vector<16xf32> to vector<16x1xf32>
    %61 = vector.broadcast %54 : vector<16x1xf32> to vector<16x128xf32>
    %62 = arith.cmpf ogt, %7, %61 : vector<16x128xf32>
    %63 = arith.extui %62 : vector<16x128xi1> to vector<16x128xi32>
    %cst_23 = arith.constant dense<0> : vector<16xi32>
    %64 = vector.multi_reduction <add>, %63, %cst_23 [1] : vector<16x128xi32> to vector<16xi32>
    %65 = vector.shape_cast %64 : vector<16xi32> to vector<16x1xi32>
    %66 = vector.broadcast %60 : vector<16x1xf32> to vector<16x128xf32>
    %67 = arith.cmpf ogt, %7, %66 : vector<16x128xf32>
    %68 = arith.extui %67 : vector<16x128xi1> to vector<16x128xi32>
    %cst_24 = arith.constant dense<0> : vector<16xi32>
    %69 = vector.multi_reduction <add>, %68, %cst_24 [1] : vector<16x128xi32> to vector<16xi32>
    %70 = vector.shape_cast %69 : vector<16xi32> to vector<16x1xi32>
    %71 = vector.broadcast %60 : vector<16x1xf32> to vector<16x256xf32>
    %72 = arith.cmpf ogt, %9, %71 : vector<16x256xf32>
    %73 = arith.extui %72 : vector<16x256xi1> to vector<16x256xi32>
    %cst_25 = arith.constant dense<0> : vector<16xi32>
    %74 = vector.multi_reduction <add>, %73, %cst_25 [1] : vector<16x256xi32> to vector<16xi32>
    %75 = vector.shape_cast %74 : vector<16xi32> to vector<16x1xi32>
    %76 = vector.broadcast %54 : vector<16x1xf32> to vector<16x256xf32>
    %77 = arith.cmpf ogt, %9, %76 : vector<16x256xf32>
    %78 = arith.extui %77 : vector<16x256xi1> to vector<16x256xi32>
    %cst_26 = arith.constant dense<0> : vector<16xi32>
    %79 = vector.multi_reduction <add>, %78, %cst_26 [1] : vector<16x256xi32> to vector<16xi32>
    %80 = vector.shape_cast %79 : vector<16xi32> to vector<16x1xi32>
    %c0_i32 = arith.constant 0 : i32
    %81 = vector.broadcast %c0_i32 : i32 to vector<16x128xi32>
    %82 = arith.cmpi eq, %10, %81 : vector<16x128xi32>
    %c0_i32_27 = arith.constant 0 : i32
    %83 = vector.shape_cast %48 : vector<16x1xi32> to vector<16x1xi32>
    %84 = vector.broadcast %83 : vector<16x1xi32> to vector<16x128xi32>
    %85 = vector.broadcast %c0_i32_27 : i32 to vector<16x128xi32>
    %86 = arith.select %82, %84, %85 : vector<16x128xi1>, vector<16x128xi32>
    %c1_i32 = arith.constant 1 : i32
    %87 = vector.broadcast %c1_i32 : i32 to vector<16x128xi32>
    %88 = arith.cmpi eq, %10, %87 : vector<16x128xi32>
    %89 = vector.shape_cast %27 : vector<16x1xi32> to vector<16x1xi32>
    %90 = vector.broadcast %89 : vector<16x1xi32> to vector<16x128xi32>
    %91 = arith.select %88, %90, %86 : vector<16x128xi1>, vector<16x128xi32>
    %c2_i32 = arith.constant 2 : i32
    %92 = vector.broadcast %c2_i32 : i32 to vector<16x128xi32>
    %93 = arith.cmpi eq, %10, %92 : vector<16x128xi32>
    %94 = vector.shape_cast %38 : vector<16x1xi32> to vector<16x1xi32>
    %95 = vector.broadcast %94 : vector<16x1xi32> to vector<16x128xi32>
    %96 = arith.select %93, %95, %91 : vector<16x128xi1>, vector<16x128xi32>
    %c3_i32 = arith.constant 3 : i32
    %97 = vector.broadcast %c3_i32 : i32 to vector<16x128xi32>
    %98 = arith.cmpi eq, %10, %97 : vector<16x128xi32>
    %99 = vector.shape_cast %65 : vector<16x1xi32> to vector<16x1xi32>
    %100 = vector.broadcast %99 : vector<16x1xi32> to vector<16x128xi32>
    %101 = arith.select %98, %100, %96 : vector<16x128xi1>, vector<16x128xi32>
    %c4_i32 = arith.constant 4 : i32
    %102 = vector.broadcast %c4_i32 : i32 to vector<16x128xi32>
    %103 = arith.cmpi eq, %10, %102 : vector<16x128xi32>
    %104 = vector.shape_cast %75 : vector<16x1xi32> to vector<16x1xi32>
    %105 = vector.broadcast %104 : vector<16x1xi32> to vector<16x128xi32>
    %106 = arith.select %103, %105, %101 : vector<16x128xi1>, vector<16x128xi32>
    %c5_i32 = arith.constant 5 : i32
    %107 = vector.broadcast %c5_i32 : i32 to vector<16x128xi32>
    %108 = arith.cmpi eq, %10, %107 : vector<16x128xi32>
    %109 = vector.shape_cast %80 : vector<16x1xi32> to vector<16x1xi32>
    %110 = vector.broadcast %109 : vector<16x1xi32> to vector<16x128xi32>
    %111 = arith.select %108, %110, %106 : vector<16x128xi1>, vector<16x128xi32>
    %c6_i32 = arith.constant 6 : i32
    %112 = vector.broadcast %c6_i32 : i32 to vector<16x128xi32>
    %113 = arith.cmpi eq, %10, %112 : vector<16x128xi32>
    %114 = vector.shape_cast %70 : vector<16x1xi32> to vector<16x1xi32>
    %115 = vector.broadcast %114 : vector<16x1xi32> to vector<16x128xi32>
    %116 = arith.select %113, %115, %111 : vector<16x128xi1>, vector<16x128xi32>
    %c0_28 = arith.constant 0 : index
    %c0_29 = arith.constant 0 : index
    %117 = vector.load %arg6[%c0_28, %c0_29] : memref<16x128xi32, #tpu.memory_space<vmem>>, vector<16x128xi32>
    tpu.vector_store %arg6[%c0_28, %c0_29], %116 {strides = array<i32>} : memref<16x128xi32, #tpu.memory_space<vmem>>, vector<16x128xi32>,
    return
  }
  func.func @transform_0(%arg0: i32) -> (i32, i32) {
    %c0_i32 = arith.constant 0 : i32
    %c0_i32_0 = arith.constant 0 : i32
    return %arg0, %c0_i32 : i32, i32
  }
  func.func @transform_1(%arg0: i32) -> (i32, i32) {
    %c0_i32 = arith.constant 0 : i32
    %c0_i32_0 = arith.constant 0 : i32
    return %arg0, %c0_i32 : i32, i32
  }
  func.func @transform_2(%arg0: i32) -> (i32, i32) {
    %c0_i32 = arith.constant 0 : i32
    %c0_i32_0 = arith.constant 0 : i32
    return %arg0, %c0_i32 : i32, i32
  }
  func.func @transform_3(%arg0: i32) -> (i32, i32) {
    %c0_i32 = arith.constant 0 : i32
    %c0_i32_0 = arith.constant 0 : i32
    %c0_i32_1 = arith.constant 0 : i32
    return %c0_i32, %c0_i32_0 : i32, i32
  }
  func.func @transform_4(%arg0: i32) -> (i32, i32) {
    %c0_i32 = arith.constant 0 : i32
    %c0_i32_0 = arith.constant 0 : i32
    %c0_i32_1 = arith.constant 0 : i32
    return %c0_i32, %c0_i32_0 : i32, i32
  }
  func.func @transform_5(%arg0: i32) -> (i32, i32) {
    %c0_i32 = arith.constant 0 : i32
    %c0_i32_0 = arith.constant 0 : i32
    return %arg0, %c0_i32 : i32, i32
  }
}

module attributes {stable_mosaic.version = 11 : i64} {
  func.func @_fused_kernel(%arg0: i32, %arg1: memref<16x4xi32, #tpu.memory_space<vmem>>, %arg2: memref<16x32xbf16, #tpu.memory_space<vmem>>, %arg3: memref<16x32xbf16, #tpu.memory_space<vmem>>, %arg4: memref<32x256xbf16, #tpu.memory_space<vmem>>, %arg5: memref<32x384xbf16, #tpu.memory_space<vmem>>, %arg6: memref<16x128xi32, #tpu.memory_space<vmem>>) attributes {dimension_semantics = [#tpu.dimension_semantics<parallel>], iteration_bounds = array<i64: 2>, scalar_prefetch = 0 : i64, scratch_operands = 0 : i64, tpu.core_type = #tpu.core_type<tc>, window_params = [{transform_indices = @transform_0, window_bounds = array<i64: 16, 4>}, {transform_indices = @transform_1, window_bounds = array<i64: 16, 32>}, {transform_indices = @transform_2, window_bounds = array<i64: 16, 32>}, {pipeline_mode = #tpu.pipeline_mode<synchronous>, transform_indices = @transform_3, window_bounds = array<i64: 32, 256>}, {pipeline_mode = #tpu.pipeline_mode<synchronous>, transform_indices = @transform_4, window_bounds = array<i64: 32, 384>}, {transform_indices = @transform_5, window_bounds = array<i64: 16, 128>}]} {
    %c0 = arith.constant 0 : index
    %c0_0 = arith.constant 0 : index
    %0 = vector.load %arg2[%c0, %c0_0] : memref<16x32xbf16, #tpu.memory_space<vmem>>, vector<16x32xbf16>
    %c0_1 = arith.constant 0 : index
    %c0_2 = arith.constant 0 : index
    %1 = vector.load %arg4[%c0_1, %c0_2] : memref<32x256xbf16, #tpu.memory_space<vmem>>, vector<32x256xbf16>
    %cst = arith.constant dense<0.000000e+00> : vector<16x256xf32>
    %2 = tpu.matmul %0, %1, %cst {dimension_numbers = #tpu.dot_dimension_numbers<[1], [0], [0], [1], [0, 0, 1, 1], [], []>} : vector<16x32xbf16>, vector<32x256xbf16>, vector<16x256xf32> -> vector<16x256xf32>
    %c0_3 = arith.constant 0 : index
    %c0_4 = arith.constant 0 : index
    %3 = vector.load %arg3[%c0_3, %c0_4] : memref<16x32xbf16, #tpu.memory_space<vmem>>, vector<16x32xbf16>
    %c0_5 = arith.constant 0 : index
    %c0_6 = arith.constant 0 : index
    %4 = vector.load %arg5[%c0_5, %c0_6] : memref<32x384xbf16, #tpu.memory_space<vmem>>, vector<32x384xbf16>
    %cst_7 = arith.constant dense<0.000000e+00> : vector<16x384xf32>
    %5 = tpu.matmul %3, %4, %cst_7 {dimension_numbers = #tpu.dot_dimension_numbers<[1], [0], [0], [1], [0, 0, 1, 1], [], []>} : vector<16x32xbf16>, vector<32x384xbf16>, vector<16x384xf32> -> vector<16x384xf32>
    %6 = vector.extract_strided_slice %2 {offsets = [0, 0], sizes = [16, 128], strides = [1, 1]} : vector<16x256xf32> to vector<16x128xf32>
    %7 = vector.extract_strided_slice %2 {offsets = [0, 128], sizes = [16, 128], strides = [1, 1]} : vector<16x256xf32> to vector<16x128xf32>
    %8 = vector.extract_strided_slice %5 {offsets = [0, 0], sizes = [16, 128], strides = [1, 1]} : vector<16x384xf32> to vector<16x128xf32>
    %9 = vector.extract_strided_slice %5 {offsets = [0, 128], sizes = [16, 256], strides = [1, 1]} : vector<16x384xf32> to vector<16x256xf32>
    %10 = tpu.iota {dimensions = array<i32: 1>} : vector<16x128xi32>
    %11 = tpu.iota {dimensions = array<i32: 1>} : vector<16x256xi32>
    %c0_8 = arith.constant 0 : index
    %c0_9 = arith.constant 0 : index
    %12 = vector.load %arg1[%c0_8, %c0_9] : memref<16x4xi32, #tpu.memory_space<vmem>>, vector<16x4xi32>
    %13 = vector.extract_strided_slice %12 {offsets = [0, 0], sizes = [16, 1], strides = [1, 1]} : vector<16x4xi32> to vector<16x1xi32>
    %14 = vector.extract_strided_slice %12 {offsets = [0, 1], sizes = [16, 1], strides = [1, 1]} : vector<16x4xi32> to vector<16x1xi32>
    %15 = vector.extract_strided_slice %12 {offsets = [0, 2], sizes = [16, 1], strides = [1, 1]} : vector<16x4xi32> to vector<16x1xi32>
    %16 = vector.extract_strided_slice %12 {offsets = [0, 3], sizes = [16, 1], strides = [1, 1]} : vector<16x4xi32> to vector<16x1xi32>
    %17 = vector.broadcast %13 : vector<16x1xi32> to vector<16x128xi32>
    %18 = arith.cmpi eq, %10, %17 : vector<16x128xi32>
    %cst_10 = arith.constant 0xFF800000 : f32
    %19 = vector.broadcast %cst_10 : f32 to vector<16x128xf32>
    %20 = arith.select %18, %6, %19 : vector<16x128xi1>, vector<16x128xf32>
    %cst_11 = arith.constant dense<0xFF800000> : vector<16xf32>
    %21 = vector.multi_reduction <maximumf>, %20, %cst_11 [1] : vector<16x128xf32> to vector<16xf32>
    %22 = vector.shape_cast %21 : vector<16xf32> to vector<16x1xf32>
    %23 = vector.broadcast %22 : vector<16x1xf32> to vector<16x128xf32>
    %24 = arith.cmpf ogt, %6, %23 : vector<16x128xf32>
    %25 = arith.extui %24 : vector<16x128xi1> to vector<16x128xi32>
    %cst_12 = arith.constant dense<0> : vector<16xi32>
    %26 = vector.multi_reduction <add>, %25, %cst_12 [1] : vector<16x128xi32> to vector<16xi32>
    %27 = vector.shape_cast %26 : vector<16xi32> to vector<16x1xi32>
    %28 = vector.broadcast %14 : vector<16x1xi32> to vector<16x128xi32>
    %29 = arith.cmpi eq, %10, %28 : vector<16x128xi32>
    %cst_13 = arith.constant 0xFF800000 : f32
    %30 = vector.broadcast %cst_13 : f32 to vector<16x128xf32>
    %31 = arith.select %29, %8, %30 : vector<16x128xi1>, vector<16x128xf32>
    %cst_14 = arith.constant dense<0xFF800000> : vector<16xf32>
    %32 = vector.multi_reduction <maximumf>, %31, %cst_14 [1] : vector<16x128xf32> to vector<16xf32>
    %33 = vector.shape_cast %32 : vector<16xf32> to vector<16x1xf32>
    %34 = vector.broadcast %33 : vector<16x1xf32> to vector<16x128xf32>
    %35 = arith.cmpf ogt, %8, %34 : vector<16x128xf32>
    %36 = arith.extui %35 : vector<16x128xi1> to vector<16x128xi32>
    %cst_15 = arith.constant dense<0> : vector<16xi32>
    %37 = vector.multi_reduction <add>, %36, %cst_15 [1] : vector<16x128xi32> to vector<16xi32>
    %38 = vector.shape_cast %37 : vector<16xi32> to vector<16x1xi32>
    %39 = arith.addf %6, %8 : vector<16x128xf32>
    %cst_16 = arith.constant 0xFF800000 : f32
    %40 = vector.broadcast %cst_16 : f32 to vector<16x128xf32>
    %41 = arith.select %18, %39, %40 : vector<16x128xi1>, vector<16x128xf32>
    %cst_17 = arith.constant dense<0xFF800000> : vector<16xf32>
    %42 = vector.multi_reduction <maximumf>, %41, %cst_17 [1] : vector<16x128xf32> to vector<16xf32>
    %43 = vector.shape_cast %42 : vector<16xf32> to vector<16x1xf32>
    %44 = vector.broadcast %43 : vector<16x1xf32> to vector<16x128xf32>
    %45 = arith.cmpf ogt, %39, %44 : vector<16x128xf32>
    %46 = arith.extui %45 : vector<16x128xi1> to vector<16x128xi32>
    %cst_18 = arith.constant dense<0> : vector<16xi32>
    %47 = vector.multi_reduction <add>, %46, %cst_18 [1] : vector<16x128xi32> to vector<16xi32>
    %48 = vector.shape_cast %47 : vector<16xi32> to vector<16x1xi32>
    %49 = vector.broadcast %15 : vector<16x1xi32> to vector<16x128xi32>
    %50 = arith.cmpi eq, %10, %49 : vector<16x128xi32>
    %cst_19 = arith.constant 0xFF800000 : f32
    %51 = vector.broadcast %cst_19 : f32 to vector<16x128xf32>
    %52 = arith.select %50, %7, %51 : vector<16x128xi1>, vector<16x128xf32>
    %cst_20 = arith.constant dense<0xFF800000> : vector<16xf32>
    %53 = vector.multi_reduction <maximumf>, %52, %cst_20 [1] : vector<16x128xf32> to vector<16xf32>
    %54 = vector.shape_cast %53 : vector<16xf32> to vector<16x1xf32>
    %55 = vector.broadcast %16 : vector<16x1xi32> to vector<16x256xi32>
    %56 = arith.cmpi eq, %11, %55 : vector<16x256xi32>
    %cst_21 = arith.constant 0xFF800000 : f32
    %57 = vector.broadcast %cst_21 : f32 to vector<16x256xf32>
    %58 = arith.select %56, %9, %57 : vector<16x256xi1>, vector<16x256xf32>
    %cst_22 = arith.constant dense<0xFF800000> : vector<16xf32>
    %59 = vector.multi_reduction <maximumf>, %58, %cst_22 [1] : vector<16x256xf32> to vector<16xf32>
    %60 = vector.shape_cast %59 : vector<16xf32> to vector<16x1xf32>
    %61 = vector.broadcast %54 : vector<16x1xf32> to vector<16x128xf32>
    %62 = arith.cmpf ogt, %7, %61 : vector<16x128xf32>
    %63 = arith.extui %62 : vector<16x128xi1> to vector<16x128xi32>
    %cst_23 = arith.constant dense<0> : vector<16xi32>
    %64 = vector.multi_reduction <add>, %63, %cst_23 [1] : vector<16x128xi32> to vector<16xi32>
    %65 = vector.shape_cast %64 : vector<16xi32> to vector<16x1xi32>
    %66 = vector.broadcast %60 : vector<16x1xf32> to vector<16x128xf32>
    %67 = arith.cmpf ogt, %7, %66 : vector<16x128xf32>
    %68 = arith.extui %67 : vector<16x128xi1> to vector<16x128xi32>
    %cst_24 = arith.constant dense<0> : vector<16xi32>
    %69 = vector.multi_reduction <add>, %68, %cst_24 [1] : vector<16x128xi32> to vector<16xi32>
    %70 = vector.shape_cast %69 : vector<16xi32> to vector<16x1xi32>
    %71 = vector.broadcast %60 : vector<16x1xf32> to vector<16x256xf32>
    %72 = arith.cmpf ogt, %9, %71 : vector<16x256xf32>
    %73 = arith.extui %72 : vector<16x256xi1> to vector<16x256xi32>
    %cst_25 = arith.constant dense<0> : vector<16xi32>
    %74 = vector.multi_reduction <add>, %73, %cst_25 [1] : vector<16x256xi32> to vector<16xi32>
    %75 = vector.shape_cast %74 : vector<16xi32> to vector<16x1xi32>
    %76 = vector.broadcast %54 : vector<16x1xf32> to vector<16x256xf32>
    %77 = arith.cmpf ogt, %9, %76 : vector<16x256xf32>
    %78 = arith.extui %77 : vector<16x256xi1> to vector<16x256xi32>
    %cst_26 = arith.constant dense<0> : vector<16xi32>
    %79 = vector.multi_reduction <add>, %78, %cst_26 [1] : vector<16x256xi32> to vector<16xi32>
    %80 = vector.shape_cast %79 : vector<16xi32> to vector<16x1xi32>
    %c0_i32 = arith.constant 0 : i32
    %81 = vector.broadcast %c0_i32 : i32 to vector<16x128xi32>
    %82 = arith.cmpi eq, %10, %81 : vector<16x128xi32>
    %c0_i32_27 = arith.constant 0 : i32
    %83 = vector.shape_cast %48 : vector<16x1xi32> to vector<16x1xi32>
    %84 = vector.broadcast %83 : vector<16x1xi32> to vector<16x128xi32>
    %85 = vector.broadcast %c0_i32_27 : i32 to vector<16x128xi32>
    %86 = arith.select %82, %84, %85 : vector<16x128xi1>, vector<16x128xi32>
    %c1_i32 = arith.constant 1 : i32
    %87 = vector.broadcast %c1_i32 : i32 to vector<16x128xi32>
    %88 = arith.cmpi eq, %10, %87 : vector<16x128xi32>
    %89 = vector.shape_cast %27 : vector<16x1xi32> to vector<16x1xi32>
    %90 = vector.broadcast %89 : vector<16x1xi32> to vector<16x128xi32>
    %91 = arith.select %88, %90, %86 : vector<16x128xi1>, vector<16x128xi32>
    %c2_i32 = arith.constant 2 : i32
    %92 = vector.broadcast %c2_i32 : i32 to vector<16x128xi32>
    %93 = arith.cmpi eq, %10, %92 : vector<16x128xi32>
    %94 = vector.shape_cast %38 : vector<16x1xi32> to vector<16x1xi32>
    %95 = vector.broadcast %94 : vector<16x1xi32> to vector<16x128xi32>
    %96 = arith.select %93, %95, %91 : vector<16x128xi1>, vector<16x128xi32>
    %c3_i32 = arith.constant 3 : i32
    %97 = vector.broadcast %c3_i32 : i32 to vector<16x128xi32>
    %98 = arith.cmpi eq, %10, %97 : vector<16x128xi32>
    %99 = vector.shape_cast %65 : vector<16x1xi32> to vector<16x1xi32>
    %100 = vector.broadcast %99 : vector<16x1xi32> to vector<16x128xi32>
    %101 = arith.select %98, %100, %96 : vector<16x128xi1>, vector<16x128xi32>
    %c4_i32 = arith.constant 4 : i32
    %102 = vector.broadcast %c4_i32 : i32 to vector<16x128xi32>
    %103 = arith.cmpi eq, %10, %102 : vector<16x128xi32>
    %104 = vector.shape_cast %75 : vector<16x1xi32> to vector<16x1xi32>
    %105 = vector.broadcast %104 : vector<16x1xi32> to vector<16x128xi32>
    %106 = arith.select %103, %105, %101 : vector<16x128xi1>, vector<16x128xi32>
    %c5_i32 = arith.constant 5 : i32
    %107 = vector.broadcast %c5_i32 : i32 to vector<16x128xi32>
    %108 = arith.cmpi eq, %10, %107 : vector<16x128xi32>
    %109 = vector.shape_cast %80 : vector<16x1xi32> to vector<16x1xi32>
    %110 = vector.broadcast %109 : vector<16x1xi32> to vector<16x128xi32>
    %111 = arith.select %108, %110, %106 : vector<16x128xi1>, vector<16x128xi32>
    %c6_i32 = arith.constant 6 : i32
    %112 = vector.broadcast %c6_i32 : i32 to vector<16x128xi32>
    %113 = arith.cmpi eq, %10, %112 : vector<16x128xi32>
    %114 = vector.shape_cast %70 : vector<16x1xi32> to vector<16x1xi32>
    %115 = vector.broadcast %114 : vector<16x1xi32> to vector<16x128xi32>
    %116 = arith.select %113, %115, %111 : vector<16x128xi1>, vector<16x128xi32>
    %c0_28 = arith.constant 0 : index
    %c0_29 = arith.constant 0 : index
    %117 = vector.load %arg6[%c0_28, %c0_29] : memref<16x128xi32, #tpu.memory_space<vmem>>, vector<16x128xi32>
    tpu.vector_store %arg6[%c0_28, %c0_29], %116 {strides = array<i32>} : memref<16x128xi32, #tpu.memory_space<vmem>>, vector<16x128xi32>,
    return
  }
  func.func @transform_0(%arg0: i32) -> (i32, i32) {
    %c0_i32 = arith.constant 0 : i32
    %c0_i32_0 = arith.constant 0 : i32
    return %arg0, %c0_i32 : i32, i32
  }
  func.func @transform_1(%arg0: i32) -> (i32, i32) {
    %c0_i32 = arith.constant 0 : i32
    %c0_i32_0 = arith.constant 0 : i32
    return %arg0, %c0_i32 : i32, i32
  }
  func.func @transform_2(%arg0: i32) -> (i32, i32) {
    %c0_i32 = arith.constant 0 : i32
    %c0_i32_0 = arith.constant 0 : i32
    return %arg0, %c0_i32 : i32, i32
  }
  func.func @transform_3(%arg0: i32) -> (i32, i32) {
    %c0_i32 = arith.constant 0 : i32
    %c0_i32_0 = arith.constant 0 : i32
    %c0_i32_1 = arith.constant 0 : i32
    return %c0_i32, %c0_i32_0 : i32, i32
  }
  func.func @transform_4(%arg0: i32) -> (i32, i32) {
    %c0_i32 = arith.constant 0 : i32
    %c0_i32_0 = arith.constant 0 : i32
    %c0_i32_1 = arith.constant 0 : i32
    return %c0_i32, %c0_i32_0 : i32, i32
  }
  func.func @transform_5(%arg0: i32) -> (i32, i32) {
    %c0_i32 = arith.constant 0 : i32
    %c0_i32_0 = arith.constant 0 : i32
    return %arg0, %c0_i32 : i32, i32
  }
}

</mosaic_0001>

<bundles_post_ra>
// kernel: tpu_custom_call.1
= control target key start
LH: loop header
LB: loop body
LE: loop exit
PB: predicated region body
PF: predicated region fallthrough
CT: control target
= control target key end

     0   :  { %s1786_s0 = inlined_call_operand.vmem [shape: s32[32,4], index: 0, kind: input, shape index: {}]   ;;  %s1787_s1 = inlined_call_operand.hbm [shape: bf16[32,32], index: 1, kind: input, shape index: {}]   ;;  %s1788_s2 = inlined_call_operand.hbm [shape: bf16[32,32], index: 2, kind: input, shape index: {}]   ;;  %s1789_s3 = inlined_call_operand.hbm [shape: bf16[32,256], index: 3, kind: input, shape index: {}]   ;;  %s1790_s4 = inlined_call_operand.vmem [shape: bf16[32,384], index: 4, kind: input, shape index: {}]   ;;  %s1791_s5 = inlined_call_operand.hbm [shape: s32[32,128], index: 5, kind: output, shape index: {}]  }
   0x1   :  { %1795 = sst [smem:[#allocation13_spill]] %s1787_s1 }
   0x2   :  { %1796 = sst [smem:[#allocation14_spill]] %s1789_s3 }
   0x3   :  { %10 = vsyncpa [#allocation3], 0 }
   0x4   :  { %12 = vsyncpa [#allocation3 + $0x1], 0 }
   0x5   :  { %13 = vsyncpa [#allocation6], 0 }
   0x6   :  { %15 = vsyncpa [#allocation6 + $0x1], 0 }
   0x7   :  { %16 = vsyncpa [#allocation4], 0 }
   0x8   :  { %18 = vsyncpa [#allocation4 + $0x1], 0  ;;  %s1330_s18 = smov 0   ;;  %s1332_s19 = smov 0  }
   0x9   :  { %s1334_s20 = smov 0   ;;  %s1336_s21 = smov 0  }
   0xa LB: > { %s1351_s22 = sadd.s32 4294967295, %s1282_s21   ;;  %s972_s23 = sadd.s32 4294967294, %s1282_s21   ;;  %s1282_s21 = sphi %s1336_s21, %s1815_s21   ;;  %s1278_s20 = sphi %s1334_s20, %s1814_s20   ;;  %s1274_s19 = sphi %s1332_s19, %s1813_s19   ;;  %s1270_s18 = sphi %s1330_s18, %s1812_s18  }
   0xb   : > { %p70_p0 = scmp.ne.s32.totalorder %s1274_s19, %s1270_s18  ;;  %p1792_p1 = scmp.eq.s32.totalorder %s1351_s22, 0 }
   0xc   : > { %p168_p3 = scmp.eq.s32.totalorder %s972_s23, 1  ;;  %p973_p5 = scmp.ge.s32.totalorder %s1282_s21, 1 }
   0xd   : > { %p1360_p4 = por %p1792_p1, %p70_p0  ;;  %p175_p7 = scmp.lt.s32.totalorder %s1282_s21, 3 }
   0xe   : > { %p1365_p6 = por %p168_p3, %p70_p0  ;;  %s1284_s27 = smov [#allocation7]  }
   0xf   : > { %s1797_s24 = scalar_select %p1360_p4, 1, 0 }
  0x10   : > { %s1798_s25 = scalar_select %p1365_p6, 1, 0 }
  0x11   : > { %p1370_p8 = pnand %p973_p5, %p175_p7  ;;  %s187_s28 = sshll.u32 %s1284_s27, 4  ;;  %s1374_s28 = int_to_ptr.vmem [resolvable:$true] %s187_s28 }
  0x12   : > { %s1386_s30 = sadd.s32 1, %s1282_s21   ;;  %s57_s6 = sadd.s32 1, %s1278_s20 }
  0x13   : > { %s1799_s26 = scalar_select %p1370_p8, 1, 0 }
  0x14   : > { %p1033_p9 = pneg %p1370_p8  ;;  %s54_s7 = ssub.s32 %s1282_s21, %s1386_s30 }
  0x15   : > { %s1801_s3 = sld [smem:[#allocation14_spill]] }
  0x16   : > { %p1381_p11 = pnand %p1033_p9, %p1792_p1 }
  0x18   : > { %p1122_p13 = pneg %p1381_p11 }
  0x1b   : > { %s1120_s10 = scalar_lea.hbm %s1801_s3, 512 }
  0x1c   : > { %p1121_p12 = scmp.ne.s32.totalorder %s1801_s3, %s1120_s10  ;;  %p1127_p5 = scmp.lt.u32.totalorder %s1120_s10, %s1801_s3 }
  0x1e   : > { %p1123_p0 = pnand %p1122_p13, %p1121_p12 }
  0x20   : > { %p1124_p3 = pneg %p1123_p0 }
  0x22   : > { %p1129_p7 = pnand %p1127_p5, %p1124_p3 }
  0x24   : > { %1132 = shalt.err (!%p1129_p7)
}
  0x25   : > { %s1133_s15 = scalar_lea.vmem %s1374_s28, 512  ;;  %p1141_p2 = scmp.lt.s32.totalorder %s1374_s28, %s1374_s28 }
  0x26   : > { %p1134_p9 = scmp.ne.s32.totalorder %s1374_s28, %s1133_s15  ;;  %p1142_p6 = scmp.lt.s32.totalorder %s1133_s15, %s1133_s15 }
  0x28   : > { %p1136_p10 = pnand %p1134_p9, %p1122_p13  ;;  %p1143_p4 = por %p1142_p6, %p1141_p2 }
  0x2a   : > { %p1137_p1 = pneg %p1136_p10 }
  0x2c   : > { %p1144_p8 = pnand %p1143_p4, %p1137_p1 }
  0x2e   : > { %1147 = shalt.err (!%p1144_p8)
}
  0x2f   : > { %s1285_s16 = smov 128   ;;  %s1286_s17 = smov 8  }
  0x30   : > { %1036 = dma.hbm_to_vmem [thread:$0]  (!%p1381_p11), %s1801_s3, 512, %s1374_s28, [#allocation6], %s1285_s16, %s1285_s16, %s1286_s17  }
  0x31   : > { %p55_p1 = scmp.eq.s32.totalorder %s54_s7, 0  ;;  %p64_p2 = scmp.ne.s32.totalorder %s1278_s20, %s1274_s19 }
  0x32   : > { %p65_p4 = scmp.eq.s32.totalorder %s1282_s21, 0  ;;  %p1049_p6 = scmp.lt.s32.totalorder %s1282_s21, 2 }
  0x33   : > { %s1417_s8 = scalar_select %p55_p1, %s1278_s20, %s57_s6  }
  0x34   : > { %p66_p8 = por %p65_p4, %p64_p2  ;;  %p1802_p10 = scmp.eq.s32.totalorder %s1351_s22, 1 }
  0x35   : > { %s213_s10 = sand.u32 1, %s1278_s20   ;;  %s1009_s11 = sshll.u32 %s1282_s21, 7 }
  0x36   : > { %p1421_p12 = por %p1802_p10, %p64_p2  ;;  %s1427_s12 = sshll.u32 %s213_s10, 3 }
  0x37   : > { %s1804_s1 = sld [smem:[#allocation13_spill]]  ;;  %s217_s6 = scalar_lea.vmem [#allocation2], %s1427_s12 }
  0x38   : > { %s224_s7 = sshll.u32 %s217_s6, 4  ;;  %p1437_p11 = pnand %p1049_p6, %p66_p8  ;;  %s1441_s7 = int_to_ptr.vmem [resolvable:$true] %s224_s7 }
  0x39   : > { %s1443_s15 = scalar_lea.sflag [#allocation3], %s213_s10 }
  0x3a   : > { %p1150_p0 = pneg %p1437_p11 }
  0x3d   : > { %s1434_s28 = scalar_lea.hbm %s1804_s1, %s1009_s11  ;;  %s1153_s27 = scalar_lea.hbm %s1804_s1, 256 }
  0x3e   : > { %s1148_s16 = scalar_lea.hbm %s1434_s28, 128  ;;  %p1154_p7 = scmp.lt.u32.totalorder %s1434_s28, %s1804_s1 }
  0x3f   : > { %p1149_p13 = scmp.ne.s32.totalorder %s1434_s28, %s1148_s16  ;;  %p1155_p9 = scmp.lt.u32.totalorder %s1153_s27, %s1148_s16 }
  0x40   : > { %p1157_p2 = scmp.lt.u32.totalorder %s1148_s16, %s1434_s28 }
  0x41   : > { %p1151_p3 = pnand %p1150_p0, %p1149_p13  ;;  %p1156_p1 = por %p1155_p9, %p1154_p7 }
  0x43   : > { %p1152_p5 = pneg %p1151_p3  ;;  %p1158_p4 = por %p1157_p2, %p1156_p1 }
  0x45   : > { %p1159_p6 = pnand %p1158_p4, %p1152_p5 }
  0x47   : > { %1162 = shalt.err (!%p1159_p6)
}
  0x48   : > { %s1163_s10 = scalar_lea.vmem %s1441_s7, 128  ;;  %s1287_s6 = smov [#allocation2]  }
  0x49   : > { %p1164_p8 = scmp.ne.s32.totalorder %s1441_s7, %s1163_s10  ;;  %s1168_s17 = sshll.u32 %s1287_s6, 4  ;;  %s1169_s17 = int_to_ptr.vmem [resolvable:$false] %s1168_s17 }
  0x4a   : > { %s1170_s23 = scalar_lea.vmem %s1169_s17, 256  ;;  %p1171_p3 = scmp.lt.s32.totalorder %s1441_s7, %s1169_s17 }
  0x4b   : > { %p1166_p10 = pnand %p1164_p8, %p1150_p0  ;;  %p1172_p7 = scmp.lt.s32.totalorder %s1170_s23, %s1163_s10 }
  0x4d   : > { %p1167_p13 = pneg %p1166_p10  ;;  %p1173_p9 = por %p1172_p7, %p1171_p3 }
  0x4f   : > { %p1174_p1 = pnand %p1173_p9, %p1167_p13 }
  0x51   : > { %1177 = shalt.err (!%p1174_p1)
}
  0x52   : > { %s1288_s16 = smov 64   ;;  %s1289_s27 = smov 4  }
  0x53   : > { %1040 = dma.hbm_to_vmem [thread:$0]  (!%p1437_p11), %s1434_s28, 128, %s1441_s7, %s1443_s15, %s1288_s16, %s1288_s16, %s1289_s27  }
  0x54   : > { %s1479_s10 = scalar_lea.hbm %s1788_s2, %s1009_s11  ;;  %s238_s6 = scalar_lea.vmem [#allocation5], %s1427_s12 }
  0x55   : > { %s245_s17 = sshll.u32 %s238_s6, 4  ;;  %s234_s23 = sand.u32 1, %s1282_s21   ;;  %s1483_s17 = int_to_ptr.vmem [resolvable:$true] %s245_s17 }
  0x56   : > { %s1485_s1 = scalar_lea.sflag [#allocation6], %s234_s23  ;;  %s1178_s3 = scalar_lea.hbm %s1479_s10, 128 }
  0x57   : > { %p1179_p5 = scmp.ne.s32.totalorder %s1479_s10, %s1178_s3  ;;  %s1183_s7 = scalar_lea.hbm %s1788_s2, 256 }
  0x58   : > { %p1184_p6 = scmp.lt.u32.totalorder %s1479_s10, %s1788_s2  ;;  %p1185_p8 = scmp.lt.u32.totalorder %s1183_s7, %s1178_s3 }
  0x59   : > { %p1181_p2 = pnand %p1179_p5, %p1150_p0  ;;  %p1187_p13 = scmp.lt.u32.totalorder %s1178_s3, %s1479_s10 }
  0x5a   : > { %p1186_p10 = por %p1185_p8, %p1184_p6 }
  0x5b   : > { %p1182_p4 = pneg %p1181_p2 }
  0x5c   : > { %p1188_p3 = por %p1187_p13, %p1186_p10 }
  0x5e   : > { %p1189_p7 = pnand %p1188_p3, %p1182_p4 }
  0x60   : > { %1192 = shalt.err (!%p1189_p7)
}
  0x61   : > { %s1193_s12 = scalar_lea.vmem %s1483_s17, 128  ;;  %s1290_s13 = smov [#allocation5]  }
  0x62   : > { %p1194_p9 = scmp.ne.s32.totalorder %s1483_s17, %s1193_s12  ;;  %s1198_s6 = sshll.u32 %s1290_s13, 4  ;;  %s1199_s6 = int_to_ptr.vmem [resolvable:$false] %s1198_s6 }
  0x63   : > { %s1200_s23 = scalar_lea.vmem %s1199_s6, 256  ;;  %p1201_p2 = scmp.lt.s32.totalorder %s1483_s17, %s1199_s6 }
  0x64   : > { %p1196_p1 = pnand %p1194_p9, %p1150_p0  ;;  %p1202_p6 = scmp.lt.s32.totalorder %s1200_s23, %s1193_s12 }
  0x66   : > { %p1197_p5 = pneg %p1196_p1  ;;  %p1203_p8 = por %p1202_p6, %p1201_p2 }
  0x68   : > { %p1204_p10 = pnand %p1203_p8, %p1197_p5 }
  0x6a   : > { %1207 = shalt.err (!%p1204_p10)
}
  0x6b   : > { %1043 = dma.hbm_to_vmem [thread:$0]  (!%p1437_p11), %s1479_s10, 128, %s1483_s17, %s1485_s1, %s1288_s16, %s1288_s16, %s1289_s27  }
  0x6c   : > { %p1806_p0 = scmp.ne.s32.totalorder %s1799_s26, 0 }
  0x6d   : > { %s1517_s3 = sand.u32 (!%p1806_p0), 1, %s1274_s19   ;;  %p1807_p4 = scmp.ne.s32.totalorder (!%p1806_p0), %s1797_s24, 0 }
  0x6e   : > { %257 = sbr.rel (%p1806_p0) target bundleno = 721 (0x2d1), region = 40  ;;  %s983_s28 = sshll.u32 (!%p1806_p0), %s1517_s3, 3 }
  0x6f   : > { %s260_s11 = scalar_lea.sflag (!%p1806_p0), [#allocation3], %s1517_s3  ;;  %s1521_s7 = scalar_lea.vmem (!%p1806_p0), [#allocation2], %s983_s28 }
  0x75   : > { %1253 = dma.done.wait (%p1807_p4), %s260_s11, 128  }
  0x76   : > { %1255 = vsyncadd (%p1807_p4), %s260_s11, 4294967168  ;;  %s268_s1 = sand.u32 1, %s1351_s22   ;;  %s1528_s14 = scalar_lea.vmem [#allocation5], %s983_s28 }
  0x77   : > { %s269_s26 = scalar_lea.sflag [#allocation6], %s268_s1 }
  0x78   : > { %1257 = dma.done.wait (%p1807_p4), %s269_s26, 128  }
  0x79   : > { %1259 = vsyncadd (%p1807_p4), %s269_s26, 4294967168  ;;  %p1808_p11 = scmp.eq.s32.totalorder %s1351_s22, 0 }
  0x7b   : > { %1261 = dma.done.wait (%p1808_p11), [#allocation6], 512   ;;  %p1809_p13 = pmov %p1808_p11 }
  0x7c   : > { %v1291_v0 = vmov 0   ;;  %s987_s16 = sshll.u32 %s1351_s22, 1  ;;  %v1292_v1 = vmov 3   ;;  %v1104_v2 = vld [vmem:[#allocation7 + $0x4] ss:$8 sps:$4 sm:$0xff]   ;;  %vm354_vm0 = vcmask 261120   ;;  %v535_v21 = vlaneseq }
  0x7d   : > { %1263 = vsyncadd (%p1809_p13), [#allocation6], 4294966784  ;;  %390 = vmatprep.mubr.bf16.mxu0 %v1291_v0  ;;  %483 = vmatprep.mubr.bf16.mxu1 %v1291_v0  ;;  %p314_p3 = scmp.lt.s32.totalorder %s987_s16, 3  ;;  %v1106_v3 = vld [vmem:[%s1790_s4 + $0x4] ss:$12 sps:$4 sm:$0xff]   ;;  %v1293_v13 = vmov 0.0  }
  0x7e   : > { %1098 = vset.pattern.permute.xlu1 %v1292_v1  ;;  %1097 = vset.pattern.permute.xlu0 %v1291_v0  ;;  %v1108_v4 = vld [vmem:[#allocation7] ss:$8 sps:$4 sm:$0xff]   ;;  %v1109_v5 = vld [vmem:[%s1790_s4] ss:$12 sps:$4 sm:$0xff]   ;;  %v1112_v7 = vld [vmem:[%s1790_s4 + $0x1c] ss:$12 sps:$4 sm:$0xff]  }
  0x7f   : > { %s1817_s16 = smov (!%p314_p3, %s987_s16), 3  ;;  %358 = vmatprep.subr.bf16.mxu0 %v1104_v2  ;;  %451 = vmatprep.subr.bf16.mxu1 %v1106_v3  ;;  %v1110_v6 = vld [vmem:[#allocation7 + $0x14] ss:$8 sps:$4 sm:$0xff]   ;;  %v1114_v8 = vld [vmem:[#allocation7 + $0x10] ss:$8 sps:$4 sm:$0xff]   ;;  %v1116_v10 = vld [vmem:[%s1521_s7] sm:$0xff]  }
  0x80   : > { %s988_s15 = sshll.u32 %s1817_s16, 3  ;;  %359 = vmatpush1.bf16.msra.mxu0 %v1108_v4  ;;  %452 = vmatpush1.bf16.msra.mxu1 %v1109_v5  ;;  %v1115_v9 = vld [vmem:[%s1790_s4 + $0x18] ss:$12 sps:$4 sm:$0xff]   ;;  %v1118_v12 = vld [vmem:[%s1790_s4 + $0x8] ss:$12 sps:$4 sm:$0xff]   ;;  %vm1294_vm1 = vmmov 0  }
  0x81   : > { %360 = vmatprep.subr.bf16.mxu0 %v1110_v6  ;;  %453 = vmatprep.subr.bf16.mxu1 %v1112_v7  ;;  %s317_s11 = scalar_lea.vmem %s1786_s0, %s988_s15  ;;  %v1117_v11 = vld [vmem:[%s1528_s14] sm:$0xff]   ;;  %v1295_v17 = vmov 1   ;;  %v1296_v18 = vmov 2   ;;  %v1568_v24 = vand.u32 127, %v535_v21  ;;  %s986_s14 = sshll.u32 %s1517_s3, 4 }
  0x82   : > { %v538_v14 = vld [vmem:[%s317_s11] sm:$0xff]  ;;  %v539_v15 = vld [vmem:[%s317_s11 + $0x8] sm:$0xff]  ;;  %s312_s24 = scalar_lea.vmem [#allocation8], %s986_s14  ;;  %s1011_s27 = sshll.u32 %s1351_s22, 8 }
  0x83   : > { %675 = vperm.xlu1 %1098, %v538_v14   ;;  %541 = vperm.xlu0 %1097, %v538_v14   ;;  %v1119_v16 = vld [vmem:[%s1790_s4 + $0x20] ss:$12 sps:$4 sm:$0xff]   ;;  %v537_v40 = vadd.s32 128, %v1568_v24  ;;  %s855_s10 = sshll.u32 %s312_s24, 4  ;;  %s1736_s29 = scalar_lea.hbm %s1791_s5, %s1011_s27  ;;  %s1738_s10 = int_to_ptr.vmem [resolvable:$true] %s855_s10 }
  0x84   : > { %361 = vmatpush1.bf16.msra.mxu0 %v1114_v8  ;;  %454 = vmatpush1.bf16.msra.mxu1 %v1115_v9  ;;  %s842_s22 = scalar_lea.sflag [#allocation4], %s1517_s3  ;;  %s1208_s12 = scalar_lea.vmem %s1738_s10, 256 }
  0x85   : > { %1015 = vmatprep.subr.bf16.mxu0 %v1293_v13  ;;  %p1209_p7 = scmp.ne.s32.totalorder %s1738_s10, %s1208_s12  ;;  %s1297_s13 = smov [#allocation8]  }
  0x86   : > { %s1212_s6 = sshll.u32 %s1297_s13, 4  ;;  %s1213_s6 = int_to_ptr.vmem [resolvable:$false] %s1212_s6 }
  0x87   : > { %994 = vmatmul.mubr.msk.bf16.vlgmr.msra.gmra.mrb[0].mxu0 %vm354_vm0, %v1116_v10  ;;  %1002 = vmatmul.mubr.msk.bf16.vlgmr.msra.gmra.mrb[0].mxu1 %vm354_vm0, %v1117_v11  ;;  %p1210_p9 = pnand %p1209_p7, %p1421_p12  ;;  %s1214_s23 = scalar_lea.vmem %s1213_s6, 512 }
  0x88   : > { %1016 = vmatpush3.bf16.msra.mxu0 %v1118_v12  ;;  %1019 = vmatprep.mubr.msk.bf16.mxu0 %vm1294_vm1, %v1293_v13  ;;  %p1215_p5 = scmp.lt.s32.totalorder %s1738_s10, %s1213_s6  ;;  %p1216_p2 = scmp.lt.s32.totalorder %s1214_s23, %s1208_s12 }
  0x89   : > { %1017 = vmatprep.subr.bf16.mxu0 %v1293_v13  ;;  %678 = vperm.xlu1 %1098, %v539_v15   ;;  %p1211_p1 = pneg %p1210_p9 }
  0x8a   : > { %544 = vperm.xlu0 %1097, %v539_v15   ;;  %p1217_p6 = por %p1216_p2, %p1215_p5 }
  0x8c   : > { %1018 = vmatpush3.bf16.msra.mxu0 %v1119_v16  ;;  %p1218_p8 = pnand %p1217_p6, %p1211_p1 }
  0x8d   : > { %1100 = vset.pattern.permute.xlu1 %v1295_v17 }
  0x8e   : > { %1099 = vset.pattern.permute.xlu0 %v1295_v17  ;;  %586 = vperm.xlu1 %1100, %v539_v15  }
  0x8f   : > { %1020 = vmatmul.mubr.msk.bf16.vlgmr.msra.gmra.mrb[4].mxu0 %vm354_vm0, %v1117_v11  ;;  %583 = vperm.xlu0 %1099, %v538_v14  }
  0x92   : > { %1101 = vset.pattern.permute.xlu1 %v1296_v18 }
  0x93   : > { %661 = vperm.xlu1 %1101, %v538_v14   ;;  %1102 = vset.pattern.permute.xlu0 %v1296_v18 }
  0x94   : > { %664 = vperm.xlu0 %1102, %v539_v15  }
  0x98   : > { %1103 = vset.pattern.permute.xlu0 %v1292_v1 }
 0x102   : > { %v676_v19 = vpop.permute.xlu1 %675  ;;  %v542_v20 = vpop.permute.xlu0 %541 }
 0x103   : > { %vm546_vm2 = vcmp.eq.s32.totalorder %v1568_v24, %v542_v20  ;;  %vm680_vm6 = vcmp.eq.s32.totalorder %v1568_v24, %v676_v19  ;;  %vm681_vm7 = vcmp.eq.s32.totalorder %v537_v40, %v676_v19 }
 0x108   : > { %v679_v22 = vpop.permute.xlu1 %678 }
 0x109   : > { %v545_v23 = vpop.permute.xlu0 %544  ;;  %vm682_vm8 = vcmp.eq.s32.totalorder %v1568_v24, %v679_v22  ;;  %vm683_vm9 = vcmp.eq.s32.totalorder %v537_v40, %v679_v22 }
 0x10a   : > { %vm547_vm4 = vcmp.eq.s32.totalorder %v1568_v24, %v545_v23 }
 0x10d   : > { %v587_v25 = vpop.permute.xlu1 %586 }
 0x10e   : > { %v584_v26 = vpop.permute.xlu0 %583  ;;  %vm589_vm5 = vcmp.eq.s32.totalorder %v1568_v24, %v587_v25 }
 0x10f   : > { %vm588_vm3 = vcmp.eq.s32.totalorder %v1568_v24, %v584_v26 }
 0x112   : > { %v662_v49 = vpop.permute.xlu1 %661 }
 0x113   : > { %v665_v55 = vpop.permute.xlu0 %664  ;;  %vm666_vm10 = vcmp.eq.s32.totalorder %v1568_v24, %v662_v49 }
 0x114   : > { %vm667_vm11 = vcmp.eq.s32.totalorder %v1568_v24, %v665_v55 }
 0x15a   : > { %v392_v27 = vpop.f32.mrb[0].mxu0  ;;  %v485_v28 = vpop.f32.mrb[0].mxu1 }
 0x15b   : > { %v1572_v29 = vpop.f32.mrb[1].mxu0  ;;  %v1574_v30 = vpop.f32.mrb[1].mxu1  ;;  %v548_v31 = vsel %vm546_vm2, %v392_v27, -inf  ;;  %v1578_v32 = vadd.f32 %v485_v28, %v392_v27  ;;  %v590_v38 = vsel %vm588_vm3, %v485_v28, -inf }
 0x15c   : > { %v1581_v33 = vpop.f32.mrb[2].mxu1  ;;  %550 = vmax.xlane.f32.xlu1 %v548_v31  ;;  %v1583_v34 = vpop.f32.mrb[2].mxu0  ;;  %v684_v45 = vsel %vm680_vm6, %v1574_v30, -inf  ;;  %v668_v56 = vsel %vm666_vm10, %v1572_v29, -inf }
 0x15d   : > { %v1585_v35 = vpop.f32.mrb[3].mxu0  ;;  %v1587_v36 = vpop.f32.mrb[3].mxu1  ;;  %v549_v37 = vsel %vm547_vm4, %v1583_v34, -inf  ;;  %v1594_v39 = vadd.f32 %v1581_v33, %v1583_v34  ;;  %v591_v41 = vsel %vm589_vm5, %v1581_v33, -inf  ;;  %v626_v44 = vsel %vm546_vm2, %v1578_v32, -inf }
 0x15e   : > { %552 = vmax.xlane.f32.xlu0 %v549_v37  ;;  %v686_v50 = vsel %vm682_vm8, %v1587_v36, -inf  ;;  %v669_v57 = vsel %vm667_vm11, %v1585_v35, -inf }
 0x15f   : > { %v627_v52 = vsel %vm547_vm4, %v1594_v39, -inf }
 0x160   : > { %592 = vmax.xlane.f32.xlu1 %v590_v38 }
 0x162   : > { %594 = vmax.xlane.f32.xlu0 %v591_v41  ;;  %v1601_v42 = vpop.f32.mrb[4].mxu0 }
 0x163   : > { %v1021_v43 = vpop.f32.mrb[5].mxu0  ;;  %v685_v46 = vsel %vm681_vm7, %v1601_v42, -inf }
 0x164   : > { %628 = vmax.xlane.f32.xlu1 %v626_v44  ;;  %v1608_v47 = vpop.f32.mrb[6].mxu0  ;;  %v688_v48 = vmax.f32 %v684_v45, %v685_v46 }
 0x165   : > { %v1022_v51 = vpop.f32.mrb[7].mxu0  ;;  %v687_v53 = vsel %vm683_vm9, %v1608_v47, -inf }
 0x166   : > { %630 = vmax.xlane.f32.xlu0 %v627_v52  ;;  %v691_v54 = vmax.f32 %v686_v50, %v687_v53 }
 0x168   : > { %689 = vmax.xlane.f32.xlu1 %v688_v48 }
 0x16a   : > { %692 = vmax.xlane.f32.xlu0 %v691_v54 }
 0x16c   : > { %670 = vmax.xlane.f32.xlu1 %v668_v56 }
 0x16e   : > { %672 = vmax.xlane.f32.xlu0 %v669_v57 }
 0x1e9   : > { %v551_v58 = vpop.xlane.xlu1 %550 }
 0x1ea   : > { %vm554_vm12 = vcmp.gt.f32.partialorder %v392_v27, %v551_v58 }
 0x1eb   : > { %v556_v59 = vsel %vm554_vm12, 1, %v1291_v0  ;;  %v553_v60 = vpop.xlane.xlu0 %552 }
 0x1ec   : > { %v558_v61 = vand.u32 65535, %v556_v59  ;;  %v559_v62 = vshrl.u32 %v556_v59, 16  ;;  %vm555_vm14 = vcmp.gt.f32.partialorder %v1583_v34, %v553_v60 }
 0x1ed   : > { %v593_v63 = vpop.xlane.xlu1 %592  ;;  %v557_v12 = vsel %vm555_vm14, 1, %v1291_v0  ;;  %vm818_vm14 = vcmp.eq.s32.totalorder %v1568_v24, 0 }
 0x1ee   : > { %vm596_vm13 = vcmp.gt.f32.partialorder %v485_v28, %v593_v63  ;;  %v560_v1 = vcvt.s32.f32 %v558_v61  ;;  %v561_v2 = vcvt.s32.f32 %v559_v62  ;;  %v570_v15 = vand.u32 65535, %v557_v12 }
 0x1ef   : > { %v598_v3 = vsel %vm596_vm13, 1, %v1291_v0  ;;  %v595_v4 = vpop.xlane.xlu0 %594  ;;  %v571_v25 = vshrl.u32 %v557_v12, 16 }
 0x1f0   : > { %562 = vadd.xlane.f32.xlu1 %v560_v1  ;;  %564 = vadd.xlane.f32.xlu0 %v561_v2  ;;  %v600_v5 = vand.u32 65535, %v598_v3  ;;  %v601_v6 = vshrl.u32 %v598_v3, 16  ;;  %vm597_vm15 = vcmp.gt.f32.partialorder %v1581_v33, %v595_v4  ;;  %v572_v38 = vcvt.s32.f32 %v570_v15 }
 0x1f1   : > { %v629_v7 = vpop.xlane.xlu1 %628  ;;  %v599_v21 = vsel %vm597_vm15, 1, %v1291_v0  ;;  %v573_v44 = vcvt.s32.f32 %v571_v25  ;;  %vm821_vm15 = vcmp.eq.s32.totalorder %v1568_v24, 1 }
 0x1f2   : > { %v602_v8 = vcvt.s32.f32 %v600_v5  ;;  %v603_v9 = vcvt.s32.f32 %v601_v6  ;;  %vm632_vm9 = vcmp.gt.f32.partialorder %v1578_v32, %v629_v7  ;;  %v612_v40 = vand.u32 65535, %v599_v21 }
 0x1f3   : > { %v1622_v10 = vpop.xlane.xlu0 %630  ;;  %v634_v43 = vsel %vm632_vm9, 1, %v1291_v0  ;;  %v613_v45 = vshrl.u32 %v599_v21, 16 }
 0x1f4   : > { %604 = vadd.xlane.f32.xlu1 %v602_v8  ;;  %606 = vadd.xlane.f32.xlu0 %v603_v9  ;;  %v614_v46 = vcvt.s32.f32 %v612_v40  ;;  %v637_v48 = vshrl.u32 %v634_v43, 16  ;;  %vm633_vm11 = vcmp.gt.f32.partialorder %v1594_v39, %v1622_v10 }
 0x1f5   : > { %v1624_v11 = vpop.xlane.xlu1 %689  ;;  %v615_v32 = vcvt.s32.f32 %v613_v45  ;;  %v635_v56 = vsel %vm633_vm11, 1, %v1291_v0 }
 0x1f6   : > { %vm750_vm0 = vcmp.gt.f32.partialorder %v1574_v30, %v1624_v11  ;;  %vm751_vm1 = vcmp.gt.f32.partialorder %v1601_v42, %v1624_v11  ;;  %v639_v52 = vcvt.s32.f32 %v637_v48  ;;  %vm722_vm12 = vcmp.gt.f32.partialorder %v1572_v29, %v1624_v11 }
 0x1f7   : > { %v1627_v13 = vpop.xlane.xlu0 %692  ;;  %v754_v22 = vsel %vm750_vm0, 1, %v1291_v0  ;;  %v755_v26 = vsel %vm751_vm1, 1, %v1291_v0  ;;  %v648_v60 = vand.u32 65535, %v635_v56  ;;  %v649_v62 = vshrl.u32 %v635_v56, 16 }
 0x1f8   : > { %vm752_vm5 = vcmp.gt.f32.partialorder %v1587_v36, %v1627_v13  ;;  %vm753_vm6 = vcmp.gt.f32.partialorder %v1608_v47, %v1627_v13  ;;  %v724_v63 = vsel %vm722_vm12, 1, %v1291_v0  ;;  %vm723_vm13 = vcmp.gt.f32.partialorder %v1585_v35, %v1627_v13 }
 0x1f9   : > { %v671_v14 = vpop.xlane.xlu1 %670  ;;  %v756_v27 = vsel %vm752_vm5, 1, %v1291_v0  ;;  %v757_v34 = vsel %vm753_vm6, 1, %v1291_v0  ;;  %v650_v39 = vcvt.s32.f32 %v648_v60  ;;  %v726_v1 = vand.u32 65535, %v724_v63 }
 0x1fa   : > { %vm694_vm2 = vcmp.gt.f32.partialorder %v1572_v29, %v671_v14  ;;  %vm784_vm3 = vcmp.gt.f32.partialorder %v1574_v30, %v671_v14  ;;  %vm785_vm4 = vcmp.gt.f32.partialorder %v1601_v42, %v671_v14  ;;  %v758_v30 = vadd.s32 %v755_v26, %v754_v22 }
 0x1fb   : > { %v788_v16 = vsel %vm784_vm3, 1, %v1291_v0  ;;  %v789_v17 = vsel %vm785_vm4, 1, %v1291_v0  ;;  %v673_v18 = vpop.xlane.xlu0 %672  ;;  %v696_v19 = vsel %vm694_vm2, 1, %v1291_v0  ;;  %v1662_v41 = vadd.s32 %v757_v34, %v756_v27 }
 0x1fc   : > { %vm786_vm7 = vcmp.gt.f32.partialorder %v1587_v36, %v673_v18  ;;  %vm787_vm8 = vcmp.gt.f32.partialorder %v1608_v47, %v673_v18  ;;  %v698_v20 = vand.u32 65535, %v696_v19  ;;  %v699_v23 = vshrl.u32 %v696_v19, 16 }
 0x1fd   : > { %v792_v31 = vadd.s32 %v789_v17, %v788_v16  ;;  %v790_v33 = vsel %vm786_vm7, 1, %v1291_v0  ;;  %v791_v36 = vsel %vm787_vm8, 1, %v1291_v0  ;;  %vm695_vm10 = vcmp.gt.f32.partialorder %v1585_v35, %v673_v18 }
 0x1fe   : > { %v700_v28 = vcvt.s32.f32 %v698_v20  ;;  %v701_v37 = vcvt.s32.f32 %v699_v23  ;;  %v1664_v42 = vadd.s32 %v791_v36, %v790_v33  ;;  %v636_v47 = vand.u32 65535, %v634_v43 }
 0x1ff   : > { %v697_v49 = vsel %vm695_vm10, 1, %v1291_v0  ;;  %v793_v55 = vand.u32 65535, %v792_v31  ;;  %v794_v58 = vshrl.u32 %v792_v31, 16  ;;  %v651_v2 = vcvt.s32.f32 %v649_v62 }
 0x200   : > { %702 = vadd.xlane.f32.xlu1 %v700_v28  ;;  %704 = vadd.xlane.f32.xlu0 %v701_v37  ;;  %v638_v50 = vcvt.s32.f32 %v636_v47  ;;  %v710_v51 = vand.u32 65535, %v697_v49  ;;  %v711_v53 = vshrl.u32 %v697_v49, 16  ;;  %v727_v3 = vshrl.u32 %v724_v63, 16 }
 0x201   : > { %v795_v59 = vcvt.s32.f32 %v793_v55  ;;  %v796_v61 = vcvt.s32.f32 %v794_v58  ;;  %v725_v4 = vsel %vm723_vm13, 1, %v1291_v0  ;;  %v728_v29 = vcvt.s32.f32 %v726_v1 }
 0x202   : > { %v712_v54 = vcvt.s32.f32 %v710_v51  ;;  %v713_v57 = vcvt.s32.f32 %v711_v53  ;;  %v738_v5 = vand.u32 65535, %v725_v4  ;;  %v729_v6 = vcvt.s32.f32 %v727_v3 }
 0x203   : > { %v739_v7 = vshrl.u32 %v725_v4, 16  ;;  %v759_v9 = vand.u32 65535, %v758_v30  ;;  %v760_v35 = vshrl.u32 %v758_v30, 16  ;;  %v772_v12 = vand.u32 65535, %v1662_v41 }
 0x204   : > { %574 = vadd.xlane.f32.xlu1 %v572_v38  ;;  %576 = vadd.xlane.f32.xlu0 %v573_v44  ;;  %v740_v8 = vcvt.s32.f32 %v738_v5  ;;  %v773_v0 = vshrl.u32 %v1662_v41, 16  ;;  %v806_v15 = vand.u32 65535, %v1664_v42  ;;  %v807_v17 = vshrl.u32 %v1664_v42, 16 }
 0x205   : > { %v741_v10 = vcvt.s32.f32 %v739_v7  ;;  %v761_v11 = vcvt.s32.f32 %v759_v9  ;;  %v762_v13 = vcvt.s32.f32 %v760_v35  ;;  %v774_v14 = vcvt.s32.f32 %v772_v12 }
 0x206   : > { %v775_v16 = vcvt.s32.f32 %v773_v0  ;;  %v808_v18 = vcvt.s32.f32 %v806_v15  ;;  %v809_v19 = vcvt.s32.f32 %v807_v17  ;;  %vm824_vm0 = vcmp.eq.s32.totalorder %v1568_v24, 2 }
 0x207   : > { %vm827_vm1 = vcmp.eq.s32.totalorder %v1568_v24, 3  ;;  %vm830_vm2 = vcmp.eq.s32.totalorder %v1568_v24, 4  ;;  %vm833_vm3 = vcmp.eq.s32.totalorder %v1568_v24, 5  ;;  %vm836_vm4 = vcmp.eq.s32.totalorder %v1568_v24, 6 }
 0x208   : > { %616 = vadd.xlane.f32.xlu1 %v614_v46  ;;  %618 = vadd.xlane.f32.xlu0 %v615_v32 }
 0x20c   : > { %640 = vadd.xlane.f32.xlu1 %v638_v50  ;;  %642 = vadd.xlane.f32.xlu0 %v639_v52 }
 0x210   : > { %714 = vadd.xlane.f32.xlu1 %v712_v54  ;;  %716 = vadd.xlane.f32.xlu0 %v713_v57 }
 0x214   : > { %797 = vadd.xlane.f32.xlu1 %v795_v59  ;;  %799 = vadd.xlane.f32.xlu0 %v796_v61 }
 0x218   : > { %652 = vadd.xlane.f32.xlu1 %v650_v39  ;;  %654 = vadd.xlane.f32.xlu0 %v651_v2 }
 0x21c   : > { %730 = vadd.xlane.f32.xlu1 %v728_v29  ;;  %732 = vadd.xlane.f32.xlu0 %v729_v6 }
 0x220   : > { %742 = vadd.xlane.f32.xlu1 %v740_v8  ;;  %744 = vadd.xlane.f32.xlu0 %v741_v10 }
 0x224   : > { %763 = vadd.xlane.f32.xlu1 %v761_v11  ;;  %765 = vadd.xlane.f32.xlu0 %v762_v13 }
 0x228   : > { %776 = vadd.xlane.f32.xlu1 %v774_v14  ;;  %778 = vadd.xlane.f32.xlu0 %v775_v16 }
 0x22c   : > { %810 = vadd.xlane.f32.xlu1 %v808_v18  ;;  %812 = vadd.xlane.f32.xlu0 %v809_v19 }
 0x27d   : > { %v563_v20 = vpop.xlane.xlu1 %562  ;;  %v565_v21 = vpop.xlane.xlu0 %564 }
 0x27e   : > { %v567_v45 = vcvt.f32.s32 %v565_v21  ;;  %v566_v54 = vcvt.f32.s32 %v563_v20 }
 0x280   : > { %v568_v51 = vshll.u32 %v567_v45, 16 }
 0x281   : > { %v605_v22 = vpop.xlane.xlu1 %604  ;;  %v607_v23 = vpop.xlane.xlu0 %606 }
 0x282   : > { %v609_v49 = vcvt.f32.s32 %v607_v23  ;;  %v569_v60 = vadd.s32 %v568_v51, %v566_v54  ;;  %v608_v39 = vcvt.f32.s32 %v605_v22 }
 0x284   : > { %v610_v57 = vshll.u32 %v609_v49, 16 }
 0x286   : > { %v611_v7 = vadd.s32 %v610_v57, %v608_v39 }
 0x28d   : > { %v703_v25 = vpop.xlane.xlu1 %702  ;;  %v705_v26 = vpop.xlane.xlu0 %704 }
 0x28e   : > { %v707_v52 = vcvt.f32.s32 %v705_v26  ;;  %v706_v3 = vcvt.f32.s32 %v703_v25 }
 0x290   : > { %v708_v61 = vshll.u32 %v707_v52, 16 }
 0x291   : > { %v1682_v27 = vpop.xlane.xlu1 %574  ;;  %v577_v28 = vpop.xlane.xlu0 %576 }
 0x292   : > { %v579_v58 = vcvt.f32.s32 %v577_v28  ;;  %v709_v10 = vadd.s32 %v708_v61, %v706_v3  ;;  %v578_v35 = vcvt.f32.s32 %v1682_v27 }
 0x294   : > { %v580_v8 = vshll.u32 %v579_v58, 16 }
 0x295   : > { %v1684_v31 = vpop.xlane.xlu1 %616  ;;  %v619_v34 = vpop.xlane.xlu0 %618 }
 0x296   : > { %v621_v4 = vcvt.f32.s32 %v619_v34  ;;  %v620_v17 = vcvt.f32.s32 %v1684_v31  ;;  %v581_v22 = vadd.s32 %v580_v8, %v578_v35 }
 0x298   : > { %v622_v18 = vshll.u32 %v621_v4, 16 }
 0x299   : > { %v641_v33 = vpop.xlane.xlu1 %640  ;;  %v643_v36 = vpop.xlane.xlu0 %642 }
 0x29a   : > { %v645_v41 = vcvt.f32.s32 %v643_v36  ;;  %v644_v46 = vcvt.f32.s32 %v641_v33 }
 0x29c   : > { %v646_v44 = vshll.u32 %v645_v41, 16 }
 0x29d   : > { %v1686_v37 = vpop.xlane.xlu1 %714  ;;  %v1688_v30 = vpop.xlane.xlu0 %716 }
 0x29e   : > { %v647_v50 = vadd.s32 %v646_v44, %v644_v46  ;;  %v719_v11 = vcvt.f32.s32 %v1688_v30  ;;  %v718_v45 = vcvt.f32.s32 %v1686_v37 }
 0x2a0   : > { %v819_v59 = vsel %vm818_vm14, %v647_v50, 0  ;;  %v720_v27 = vshll.u32 %v719_v11, 16 }
 0x2a1   : > { %v1690_v38 = vpop.xlane.xlu1 %797  ;;  %v800_v40 = vpop.xlane.xlu0 %799  ;;  %v822_v29 = vsel %vm821_vm15, %v569_v60, %v819_v59 }
 0x2a2   : > { %v802_v62 = vcvt.f32.s32 %v800_v40  ;;  %v825_v13 = vsel %vm824_vm0, %v611_v7, %v822_v29  ;;  %v801_v19 = vcvt.f32.s32 %v1690_v38  ;;  %v623_v40 = vadd.s32 %v622_v18, %v620_v17 }
 0x2a3   : > { %v828_v33 = vsel %vm827_vm1, %v709_v10, %v825_v13  ;;  %v721_v50 = vadd.s32 %v720_v27, %v718_v45 }
 0x2a4   : > { %v803_v12 = vshll.u32 %v802_v62, 16 }
 0x2a5   : > { %v653_v42 = vpop.xlane.xlu1 %652  ;;  %v655_v43 = vpop.xlane.xlu0 %654 }
 0x2a6   : > { %v657_v32 = vcvt.f32.s32 %v655_v43  ;;  %v656_v63 = vcvt.f32.s32 %v653_v42  ;;  %v804_v28 = vadd.s32 %v803_v12, %v801_v19 }
 0x2a8   : > { %v658_v55 = vshll.u32 %v657_v32, 16 }
 0x2a9   : > { %v731_v47 = vpop.xlane.xlu1 %730  ;;  %v733_v48 = vpop.xlane.xlu0 %732 }
 0x2aa   : > { %v735_v1 = vcvt.f32.s32 %v733_v48  ;;  %v659_v5 = vadd.s32 %v658_v55, %v656_v63  ;;  %v734_v23 = vcvt.f32.s32 %v731_v47 }
 0x2ac   : > { %v736_v0 = vshll.u32 %v735_v1, 16  ;;  %v820_v20 = vsel %vm818_vm14, %v659_v5, 0 }
 0x2ad   : > { %v1693_v53 = vpop.xlane.xlu1 %742  ;;  %v745_v56 = vpop.xlane.xlu0 %744  ;;  %v823_v31 = vsel %vm821_vm15, %v581_v22, %v820_v20 }
 0x2ae   : > { %v747_v34 = vcvt.f32.s32 %v745_v56  ;;  %v737_v36 = vadd.s32 %v736_v0, %v734_v23  ;;  %v826_v32 = vsel %vm824_vm0, %v623_v40, %v823_v31  ;;  %v746_v37 = vcvt.f32.s32 %v1693_v53 }
 0x2af   : > { %v829_v54 = vsel %vm827_vm1, %v721_v50, %v826_v32 }
 0x2b0   : > { %v748_v48 = vshll.u32 %v747_v34, 16 }
 0x2b1   : > { %v764_v2 = vpop.xlane.xlu1 %763  ;;  %v766_v6 = vpop.xlane.xlu0 %765 }
 0x2b2   : > { %v768_v9 = vcvt.f32.s32 %v766_v6  ;;  %v767_v14 = vcvt.f32.s32 %v764_v2  ;;  %v749_v56 = vadd.s32 %v748_v48, %v746_v37 }
 0x2b4   : > { %v769_v15 = vshll.u32 %v768_v9, 16 }
 0x2b5   : > { %v777_v16 = vpop.xlane.xlu1 %776  ;;  %v779_v21 = vpop.xlane.xlu0 %778 }
 0x2b6   : > { %v770_v25 = vadd.s32 %v769_v15, %v767_v14  ;;  %v781_v26 = vcvt.f32.s32 %v779_v21  ;;  %v780_v41 = vcvt.f32.s32 %v777_v16 }
 0x2b8   : > { %v831_v30 = vsel %vm830_vm2, %v770_v25, %v828_v33  ;;  %v782_v38 = vshll.u32 %v781_v26, 16 }
 0x2b9   : > { %v811_v42 = vpop.xlane.xlu1 %810  ;;  %v834_v43 = vsel %vm833_vm3, %v804_v28, %v831_v30  ;;  %v813_v44 = vpop.xlane.xlu0 %812 }
 0x2ba   : > { %v837_v46 = vsel %vm836_vm4, %v737_v36, %v834_v43  ;;  %v815_v47 = vcvt.f32.s32 %v813_v44  ;;  %v783_v49 = vadd.s32 %v782_v38, %v780_v41  ;;  %v814_v51 = vcvt.f32.s32 %v811_v42 }
 0x2bb   : > { %839 = vst [vmem:[%s312_s24] sm:$0xff] %v837_v46 }
 0x2bc   : > { %v816_v52 = vshll.u32 %v815_v47, 16  ;;  %v832_v57 = vsel %vm830_vm2, %v783_v49, %v829_v54 }
 0x2be   : > { %v817_v55 = vadd.s32 %v816_v52, %v814_v51 }
 0x2c0   : > { %v835_v53 = vsel %vm833_vm3, %v817_v55, %v832_v57 }
 0x2c1   : > { %v838_v58 = vsel %vm836_vm4, %v749_v56, %v835_v53 }
 0x2c2   : > { %840 = vst [vmem:[%s312_s24 + $0x8] sm:$0xff] %v838_v58 }
 0x2c3   : > { %1221 = shalt.err (!%p1218_p8)
}
 0x2c4   : > { %s1222_s28 = scalar_lea.hbm %s1736_s29, 256  ;;  %s1226_s26 = scalar_lea.hbm %s1791_s5, 512 }
 0x2c5   : > { %p1223_p10 = scmp.ne.s32.totalorder %s1736_s29, %s1222_s28  ;;  %p1227_p11 = scmp.lt.u32.totalorder %s1736_s29, %s1791_s5 }
 0x2c6   : > { %p1228_p13 = scmp.lt.u32.totalorder %s1226_s26, %s1222_s28  ;;  %p1230_p7 = scmp.lt.u32.totalorder %s1222_s28, %s1736_s29 }
 0x2c7   : > { %p1224_p0 = pnand %p1223_p10, %p1421_p12 }
 0x2c8   : > { %p1229_p3 = por %p1228_p13, %p1227_p11 }
 0x2c9   : > { %p1225_p4 = pneg %p1224_p0 }
 0x2ca   : > { %p1231_p9 = por %p1230_p7, %p1229_p3 }
 0x2cc   : > { %p1232_p1 = pnand %p1231_p9, %p1225_p4 }
 0x2ce   : > { %1235 = shalt.err (!%p1232_p1)
}
 0x2cf   : > { %s1298_s14 = smov 128   ;;  %s1299_s24 = smov 8  }
 0x2d0   : > { %1031 = dma.vmem_to_hbm [thread:$0]  (%p1421_p12), %s1738_s10, 256, %s1736_s29, %s842_s22, %s1298_s14, %s1298_s14, %s1299_s24  }
 0x2d1 PF: > { %s870_s27 = sand.u32 1, %s1270_s18   ;;  %p1810_p5 = scmp.ne.s32.totalorder %s1798_s25, 0 }
 0x2d2   : > { %p1811_p2 = scmp.ge.s32.totalorder %s1282_s21, 2  ;;  %s871_s17 = scalar_lea.sflag [#allocation4], %s870_s27 }
 0x2d4   : > { %p1045_p6 = pnand %p1811_p2, %p1810_p5 }
 0x2d6   : > { %1265 = dma.done.wait (!%p1045_p6), %s871_s17, 256  }
 0x2d7   : > { %1267 = vsyncadd (!%p1045_p6), %s871_s17, 4294967040  ;;  %p21_p8 = scmp.ge.s32.totalorder %s1386_s30, 4   ;;  %s1812_s18 = smov %s1274_s19 }
 0x2d8   : > { %s1813_s19 = smov %s1278_s20  ;;  %s1814_s20 = smov %s1417_s8 }
 0x2d9   : > { %s1815_s21 = smov %s1386_s30  ;;  %23 = sbr.rel (!%p21_p8) target bundleno = 10 (0xa), region = 105 }
 0x2e0   :  { %876 = vsyncpa [#allocation3], 1 }
 0x2e1   :  { %878 = vsyncpa [#allocation3 + $0x1], 1 }
 0x2e2   :  { %879 = vsyncpa [#allocation6], 1 }
 0x2e3   :  { %881 = vsyncpa [#allocation6 + $0x1], 1 }
 0x2e4   :  { %882 = vsyncpa [#allocation4], 1 }
 0x2e5   :  { %884 = vsyncpa [#allocation4 + $0x1], 1 }

// kernel: tpu_custom_call.1
= control target key start
LH: loop header
LB: loop body
LE: loop exit
PB: predicated region body
PF: predicated region fallthrough
CT: control target
= control target key end

     0   :  { %s1786_s0 = inlined_call_operand.vmem [shape: s32[32,4], index: 0, kind: input, shape index: {}]   ;;  %s1787_s1 = inlined_call_operand.hbm [shape: bf16[32,32], index: 1, kind: input, shape index: {}]   ;;  %s1788_s2 = inlined_call_operand.hbm [shape: bf16[32,32], index: 2, kind: input, shape index: {}]   ;;  %s1789_s3 = inlined_call_operand.hbm [shape: bf16[32,256], index: 3, kind: input, shape index: {}]   ;;  %s1790_s4 = inlined_call_operand.vmem [shape: bf16[32,384], index: 4, kind: input, shape index: {}]   ;;  %s1791_s5 = inlined_call_operand.hbm [shape: s32[32,128], index: 5, kind: output, shape index: {}]  }
   0x1   :  { %1795 = sst [smem:[#allocation13_spill]] %s1787_s1 }
   0x2   :  { %1796 = sst [smem:[#allocation14_spill]] %s1789_s3 }
   0x3   :  { %10 = vsyncpa [#allocation3], 0 }
   0x4   :  { %12 = vsyncpa [#allocation3 + $0x1], 0 }
   0x5   :  { %13 = vsyncpa [#allocation6], 0 }
   0x6   :  { %15 = vsyncpa [#allocation6 + $0x1], 0 }
   0x7   :  { %16 = vsyncpa [#allocation4], 0 }
   0x8   :  { %18 = vsyncpa [#allocation4 + $0x1], 0  ;;  %s1330_s18 = smov 0   ;;  %s1332_s19 = smov 0  }
   0x9   :  { %s1334_s20 = smov 0   ;;  %s1336_s21 = smov 0  }
   0xa LB: > { %s1351_s22 = sadd.s32 4294967295, %s1282_s21   ;;  %s972_s23 = sadd.s32 4294967294, %s1282_s21   ;;  %s1282_s21 = sphi %s1336_s21, %s1815_s21   ;;  %s1278_s20 = sphi %s1334_s20, %s1814_s20   ;;  %s1274_s19 = sphi %s1332_s19, %s1813_s19   ;;  %s1270_s18 = sphi %s1330_s18, %s1812_s18  }
   0xb   : > { %p70_p0 = scmp.ne.s32.totalorder %s1274_s19, %s1270_s18  ;;  %p1792_p1 = scmp.eq.s32.totalorder %s1351_s22, 0 }
   0xc   : > { %p168_p3 = scmp.eq.s32.totalorder %s972_s23, 1  ;;  %p973_p5 = scmp.ge.s32.totalorder %s1282_s21, 1 }
   0xd   : > { %p1360_p4 = por %p1792_p1, %p70_p0  ;;  %p175_p7 = scmp.lt.s32.totalorder %s1282_s21, 3 }
   0xe   : > { %p1365_p6 = por %p168_p3, %p70_p0  ;;  %s1284_s27 = smov [#allocation7]  }
   0xf   : > { %s1797_s24 = scalar_select %p1360_p4, 1, 0 }
  0x10   : > { %s1798_s25 = scalar_select %p1365_p6, 1, 0 }
  0x11   : > { %p1370_p8 = pnand %p973_p5, %p175_p7  ;;  %s187_s28 = sshll.u32 %s1284_s27, 4  ;;  %s1374_s28 = int_to_ptr.vmem [resolvable:$true] %s187_s28 }
  0x12   : > { %s1386_s30 = sadd.s32 1, %s1282_s21   ;;  %s57_s6 = sadd.s32 1, %s1278_s20 }
  0x13   : > { %s1799_s26 = scalar_select %p1370_p8, 1, 0 }
  0x14   : > { %p1033_p9 = pneg %p1370_p8  ;;  %s54_s7 = ssub.s32 %s1282_s21, %s1386_s30 }
  0x15   : > { %s1801_s3 = sld [smem:[#allocation14_spill]] }
  0x16   : > { %p1381_p11 = pnand %p1033_p9, %p1792_p1 }
  0x18   : > { %p1122_p13 = pneg %p1381_p11 }
  0x1b   : > { %s1120_s10 = scalar_lea.hbm %s1801_s3, 512 }
  0x1c   : > { %p1121_p12 = scmp.ne.s32.totalorder %s1801_s3, %s1120_s10  ;;  %p1127_p5 = scmp.lt.u32.totalorder %s1120_s10, %s1801_s3 }
  0x1e   : > { %p1123_p0 = pnand %p1122_p13, %p1121_p12 }
  0x20   : > { %p1124_p3 = pneg %p1123_p0 }
  0x22   : > { %p1129_p7 = pnand %p1127_p5, %p1124_p3 }
  0x24   : > { %1132 = shalt.err (!%p1129_p7)
}
  0x25   : > { %s1133_s15 = scalar_lea.vmem %s1374_s28, 512  ;;  %p1141_p2 = scmp.lt.s32.totalorder %s1374_s28, %s1374_s28 }
  0x26   : > { %p1134_p9 = scmp.ne.s32.totalorder %s1374_s28, %s1133_s15  ;;  %p1142_p6 = scmp.lt.s32.totalorder %s1133_s15, %s1133_s15 }
  0x28   : > { %p1136_p10 = pnand %p1134_p9, %p1122_p13  ;;  %p1143_p4 = por %p1142_p6, %p1141_p2 }
  0x2a   : > { %p1137_p1 = pneg %p1136_p10 }
  0x2c   : > { %p1144_p8 = pnand %p1143_p4, %p1137_p1 }
  0x2e   : > { %1147 = shalt.err (!%p1144_p8)
}
  0x2f   : > { %s1285_s16 = smov 128   ;;  %s1286_s17 = smov 8  }
  0x30   : > { %1036 = dma.hbm_to_vmem [thread:$0]  (!%p1381_p11), %s1801_s3, 512, %s1374_s28, [#allocation6], %s1285_s16, %s1285_s16, %s1286_s17  }
  0x31   : > { %p55_p1 = scmp.eq.s32.totalorder %s54_s7, 0  ;;  %p64_p2 = scmp.ne.s32.totalorder %s1278_s20, %s1274_s19 }
  0x32   : > { %p65_p4 = scmp.eq.s32.totalorder %s1282_s21, 0  ;;  %p1049_p6 = scmp.lt.s32.totalorder %s1282_s21, 2 }
  0x33   : > { %s1417_s8 = scalar_select %p55_p1, %s1278_s20, %s57_s6  }
  0x34   : > { %p66_p8 = por %p65_p4, %p64_p2  ;;  %p1802_p10 = scmp.eq.s32.totalorder %s1351_s22, 1 }
  0x35   : > { %s213_s10 = sand.u32 1, %s1278_s20   ;;  %s1009_s11 = sshll.u32 %s1282_s21, 7 }
  0x36   : > { %p1421_p12 = por %p1802_p10, %p64_p2  ;;  %s1427_s12 = sshll.u32 %s213_s10, 3 }
  0x37   : > { %s1804_s1 = sld [smem:[#allocation13_spill]]  ;;  %s217_s6 = scalar_lea.vmem [#allocation2], %s1427_s12 }
  0x38   : > { %s224_s7 = sshll.u32 %s217_s6, 4  ;;  %p1437_p11 = pnand %p1049_p6, %p66_p8  ;;  %s1441_s7 = int_to_ptr.vmem [resolvable:$true] %s224_s7 }
  0x39   : > { %s1443_s15 = scalar_lea.sflag [#allocation3], %s213_s10 }
  0x3a   : > { %p1150_p0 = pneg %p1437_p11 }
  0x3d   : > { %s1434_s28 = scalar_lea.hbm %s1804_s1, %s1009_s11  ;;  %s1153_s27 = scalar_lea.hbm %s1804_s1, 256 }
  0x3e   : > { %s1148_s16 = scalar_lea.hbm %s1434_s28, 128  ;;  %p1154_p7 = scmp.lt.u32.totalorder %s1434_s28, %s1804_s1 }
  0x3f   : > { %p1149_p13 = scmp.ne.s32.totalorder %s1434_s28, %s1148_s16  ;;  %p1155_p9 = scmp.lt.u32.totalorder %s1153_s27, %s1148_s16 }
  0x40   : > { %p1157_p2 = scmp.lt.u32.totalorder %s1148_s16, %s1434_s28 }
  0x41   : > { %p1151_p3 = pnand %p1150_p0, %p1149_p13  ;;  %p1156_p1 = por %p1155_p9, %p1154_p7 }
  0x43   : > { %p1152_p5 = pneg %p1151_p3  ;;  %p1158_p4 = por %p1157_p2, %p1156_p1 }
  0x45   : > { %p1159_p6 = pnand %p1158_p4, %p1152_p5 }
  0x47   : > { %1162 = shalt.err (!%p1159_p6)
}
  0x48   : > { %s1163_s10 = scalar_lea.vmem %s1441_s7, 128  ;;  %s1287_s6 = smov [#allocation2]  }
  0x49   : > { %p1164_p8 = scmp.ne.s32.totalorder %s1441_s7, %s1163_s10  ;;  %s1168_s17 = sshll.u32 %s1287_s6, 4  ;;  %s1169_s17 = int_to_ptr.vmem [resolvable:$false] %s1168_s17 }
  0x4a   : > { %s1170_s23 = scalar_lea.vmem %s1169_s17, 256  ;;  %p1171_p3 = scmp.lt.s32.totalorder %s1441_s7, %s1169_s17 }
  0x4b   : > { %p1166_p10 = pnand %p1164_p8, %p1150_p0  ;;  %p1172_p7 = scmp.lt.s32.totalorder %s1170_s23, %s1163_s10 }
  0x4d   : > { %p1167_p13 = pneg %p1166_p10  ;;  %p1173_p9 = por %p1172_p7, %p1171_p3 }
  0x4f   : > { %p1174_p1 = pnand %p1173_p9, %p1167_p13 }
  0x51   : > { %1177 = shalt.err (!%p1174_p1)
}
  0x52   : > { %s1288_s16 = smov 64   ;;  %s1289_s27 = smov 4  }
  0x53   : > { %1040 = dma.hbm_to_vmem [thread:$0]  (!%p1437_p11), %s1434_s28, 128, %s1441_s7, %s1443_s15, %s1288_s16, %s1288_s16, %s1289_s27  }
  0x54   : > { %s1479_s10 = scalar_lea.hbm %s1788_s2, %s1009_s11  ;;  %s238_s6 = scalar_lea.vmem [#allocation5], %s1427_s12 }
  0x55   : > { %s245_s17 = sshll.u32 %s238_s6, 4  ;;  %s234_s23 = sand.u32 1, %s1282_s21   ;;  %s1483_s17 = int_to_ptr.vmem [resolvable:$true] %s245_s17 }
  0x56   : > { %s1485_s1 = scalar_lea.sflag [#allocation6], %s234_s23  ;;  %s1178_s3 = scalar_lea.hbm %s1479_s10, 128 }
  0x57   : > { %p1179_p5 = scmp.ne.s32.totalorder %s1479_s10, %s1178_s3  ;;  %s1183_s7 = scalar_lea.hbm %s1788_s2, 256 }
  0x58   : > { %p1184_p6 = scmp.lt.u32.totalorder %s1479_s10, %s1788_s2  ;;  %p1185_p8 = scmp.lt.u32.totalorder %s1183_s7, %s1178_s3 }
  0x59   : > { %p1181_p2 = pnand %p1179_p5, %p1150_p0  ;;  %p1187_p13 = scmp.lt.u32.totalorder %s1178_s3, %s1479_s10 }
  0x5a   : > { %p1186_p10 = por %p1185_p8, %p1184_p6 }
  0x5b   : > { %p1182_p4 = pneg %p1181_p2 }
  0x5c   : > { %p1188_p3 = por %p1187_p13, %p1186_p10 }
  0x5e   : > { %p1189_p7 = pnand %p1188_p3, %p1182_p4 }
  0x60   : > { %1192 = shalt.err (!%p1189_p7)
}
  0x61   : > { %s1193_s12 = scalar_lea.vmem %s1483_s17, 128  ;;  %s1290_s13 = smov [#allocation5]  }
  0x62   : > { %p1194_p9 = scmp.ne.s32.totalorder %s1483_s17, %s1193_s12  ;;  %s1198_s6 = sshll.u32 %s1290_s13, 4  ;;  %s1199_s6 = int_to_ptr.vmem [resolvable:$false] %s1198_s6 }
  0x63   : > { %s1200_s23 = scalar_lea.vmem %s1199_s6, 256  ;;  %p1201_p2 = scmp.lt.s32.totalorder %s1483_s17, %s1199_s6 }
  0x64   : > { %p1196_p1 = pnand %p1194_p9, %p1150_p0  ;;  %p1202_p6 = scmp.lt.s32.totalorder %s1200_s23, %s1193_s12 }
  0x66   : > { %p1197_p5 = pneg %p1196_p1  ;;  %p1203_p8 = por %p1202_p6, %p1201_p2 }
  0x68   : > { %p1204_p10 = pnand %p1203_p8, %p1197_p5 }
  0x6a   : > { %1207 = shalt.err (!%p1204_p10)
}
  0x6b   : > { %1043 = dma.hbm_to_vmem [thread:$0]  (!%p1437_p11), %s1479_s10, 128, %s1483_s17, %s1485_s1, %s1288_s16, %s1288_s16, %s1289_s27  }
  0x6c   : > { %p1806_p0 = scmp.ne.s32.totalorder %s1799_s26, 0 }
  0x6d   : > { %s1517_s3 = sand.u32 (!%p1806_p0), 1, %s1274_s19   ;;  %p1807_p4 = scmp.ne.s32.totalorder (!%p1806_p0), %s1797_s24, 0 }
  0x6e   : > { %257 = sbr.rel (%p1806_p0) target bundleno = 721 (0x2d1), region = 40  ;;  %s983_s28 = sshll.u32 (!%p1806_p0), %s1517_s3, 3 }
  0x6f   : > { %s260_s11 = scalar_lea.sflag (!%p1806_p0), [#allocation3], %s1517_s3  ;;  %s1521_s7 = scalar_lea.vmem (!%p1806_p0), [#allocation2], %s983_s28 }
  0x75   : > { %1253 = dma.done.wait (%p1807_p4), %s260_s11, 128  }
  0x76   : > { %1255 = vsyncadd (%p1807_p4), %s260_s11, 4294967168  ;;  %s268_s1 = sand.u32 1, %s1351_s22   ;;  %s1528_s14 = scalar_lea.vmem [#allocation5], %s983_s28 }
  0x77   : > { %s269_s26 = scalar_lea.sflag [#allocation6], %s268_s1 }
  0x78   : > { %1257 = dma.done.wait (%p1807_p4), %s269_s26, 128  }
  0x79   : > { %1259 = vsyncadd (%p1807_p4), %s269_s26, 4294967168  ;;  %p1808_p11 = scmp.eq.s32.totalorder %s1351_s22, 0 }
  0x7b   : > { %1261 = dma.done.wait (%p1808_p11), [#allocation6], 512   ;;  %p1809_p13 = pmov %p1808_p11 }
  0x7c   : > { %v1291_v0 = vmov 0   ;;  %s987_s16 = sshll.u32 %s1351_s22, 1  ;;  %v1292_v1 = vmov 3   ;;  %v1104_v2 = vld [vmem:[#allocation7 + $0x4] ss:$8 sps:$4 sm:$0xff]   ;;  %vm354_vm0 = vcmask 261120   ;;  %v535_v21 = vlaneseq }
  0x7d   : > { %1263 = vsyncadd (%p1809_p13), [#allocation6], 4294966784  ;;  %390 = vmatprep.mubr.bf16.mxu0 %v1291_v0  ;;  %483 = vmatprep.mubr.bf16.mxu1 %v1291_v0  ;;  %p314_p3 = scmp.lt.s32.totalorder %s987_s16, 3  ;;  %v1106_v3 = vld [vmem:[%s1790_s4 + $0x4] ss:$12 sps:$4 sm:$0xff]   ;;  %v1293_v13 = vmov 0.0  }
  0x7e   : > { %1098 = vset.pattern.permute.xlu1 %v1292_v1  ;;  %1097 = vset.pattern.permute.xlu0 %v1291_v0  ;;  %v1108_v4 = vld [vmem:[#allocation7] ss:$8 sps:$4 sm:$0xff]   ;;  %v1109_v5 = vld [vmem:[%s1790_s4] ss:$12 sps:$4 sm:$0xff]   ;;  %v1112_v7 = vld [vmem:[%s1790_s4 + $0x1c] ss:$12 sps:$4 sm:$0xff]  }
  0x7f   : > { %s1817_s16 = smov (!%p314_p3, %s987_s16), 3  ;;  %358 = vmatprep.subr.bf16.mxu0 %v1104_v2  ;;  %451 = vmatprep.subr.bf16.mxu1 %v1106_v3  ;;  %v1110_v6 = vld [vmem:[#allocation7 + $0x14] ss:$8 sps:$4 sm:$0xff]   ;;  %v1114_v8 = vld [vmem:[#allocation7 + $0x10] ss:$8 sps:$4 sm:$0xff]   ;;  %v1116_v10 = vld [vmem:[%s1521_s7] sm:$0xff]  }
  0x80   : > { %s988_s15 = sshll.u32 %s1817_s16, 3  ;;  %359 = vmatpush1.bf16.msra.mxu0 %v1108_v4  ;;  %452 = vmatpush1.bf16.msra.mxu1 %v1109_v5  ;;  %v1115_v9 = vld [vmem:[%s1790_s4 + $0x18] ss:$12 sps:$4 sm:$0xff]   ;;  %v1118_v12 = vld [vmem:[%s1790_s4 + $0x8] ss:$12 sps:$4 sm:$0xff]   ;;  %vm1294_vm1 = vmmov 0  }
  0x81   : > { %360 = vmatprep.subr.bf16.mxu0 %v1110_v6  ;;  %453 = vmatprep.subr.bf16.mxu1 %v1112_v7  ;;  %s317_s11 = scalar_lea.vmem %s1786_s0, %s988_s15  ;;  %v1117_v11 = vld [vmem:[%s1528_s14] sm:$0xff]   ;;  %v1295_v17 = vmov 1   ;;  %v1296_v18 = vmov 2   ;;  %v1568_v24 = vand.u32 127, %v535_v21  ;;  %s986_s14 = sshll.u32 %s1517_s3, 4 }
  0x82   : > { %v538_v14 = vld [vmem:[%s317_s11] sm:$0xff]  ;;  %v539_v15 = vld [vmem:[%s317_s11 + $0x8] sm:$0xff]  ;;  %s312_s24 = scalar_lea.vmem [#allocation8], %s986_s14  ;;  %s1011_s27 = sshll.u32 %s1351_s22, 8 }
  0x83   : > { %675 = vperm.xlu1 %1098, %v538_v14   ;;  %541 = vperm.xlu0 %1097, %v538_v14   ;;  %v1119_v16 = vld [vmem:[%s1790_s4 + $0x20] ss:$12 sps:$4 sm:$0xff]   ;;  %v537_v40 = vadd.s32 128, %v1568_v24  ;;  %s855_s10 = sshll.u32 %s312_s24, 4  ;;  %s1736_s29 = scalar_lea.hbm %s1791_s5, %s1011_s27  ;;  %s1738_s10 = int_to_ptr.vmem [resolvable:$true] %s855_s10 }
  0x84   : > { %361 = vmatpush1.bf16.msra.mxu0 %v1114_v8  ;;  %454 = vmatpush1.bf16.msra.mxu1 %v1115_v9  ;;  %s842_s22 = scalar_lea.sflag [#allocation4], %s1517_s3  ;;  %s1208_s12 = scalar_lea.vmem %s1738_s10, 256 }
  0x85   : > { %1015 = vmatprep.subr.bf16.mxu0 %v1293_v13  ;;  %p1209_p7 = scmp.ne.s32.totalorder %s1738_s10, %s1208_s12  ;;  %s1297_s13 = smov [#allocation8]  }
  0x86   : > { %s1212_s6 = sshll.u32 %s1297_s13, 4  ;;  %s1213_s6 = int_to_ptr.vmem [resolvable:$false] %s1212_s6 }
  0x87   : > { %994 = vmatmul.mubr.msk.bf16.vlgmr.msra.gmra.mrb[0].mxu0 %vm354_vm0, %v1116_v10  ;;  %1002 = vmatmul.mubr.msk.bf16.vlgmr.msra.gmra.mrb[0].mxu1 %vm354_vm0, %v1117_v11  ;;  %p1210_p9 = pnand %p1209_p7, %p1421_p12  ;;  %s1214_s23 = scalar_lea.vmem %s1213_s6, 512 }
  0x88   : > { %1016 = vmatpush3.bf16.msra.mxu0 %v1118_v12  ;;  %1019 = vmatprep.mubr.msk.bf16.mxu0 %vm1294_vm1, %v1293_v13  ;;  %p1215_p5 = scmp.lt.s32.totalorder %s1738_s10, %s1213_s6  ;;  %p1216_p2 = scmp.lt.s32.totalorder %s1214_s23, %s1208_s12 }
  0x89   : > { %1017 = vmatprep.subr.bf16.mxu0 %v1293_v13  ;;  %678 = vperm.xlu1 %1098, %v539_v15   ;;  %p1211_p1 = pneg %p1210_p9 }
  0x8a   : > { %544 = vperm.xlu0 %1097, %v539_v15   ;;  %p1217_p6 = por %p1216_p2, %p1215_p5 }
  0x8c   : > { %1018 = vmatpush3.bf16.msra.mxu0 %v1119_v16  ;;  %p1218_p8 = pnand %p1217_p6, %p1211_p1 }
  0x8d   : > { %1100 = vset.pattern.permute.xlu1 %v1295_v17 }
  0x8e   : > { %1099 = vset.pattern.permute.xlu0 %v1295_v17  ;;  %586 = vperm.xlu1 %1100, %v539_v15  }
  0x8f   : > { %1020 = vmatmul.mubr.msk.bf16.vlgmr.msra.gmra.mrb[4].mxu0 %vm354_vm0, %v1117_v11  ;;  %583 = vperm.xlu0 %1099, %v538_v14  }
  0x92   : > { %1101 = vset.pattern.permute.xlu1 %v1296_v18 }
  0x93   : > { %661 = vperm.xlu1 %1101, %v538_v14   ;;  %1102 = vset.pattern.permute.xlu0 %v1296_v18 }
  0x94   : > { %664 = vperm.xlu0 %1102, %v539_v15  }
  0x98   : > { %1103 = vset.pattern.permute.xlu0 %v1292_v1 }
 0x102   : > { %v676_v19 = vpop.permute.xlu1 %675  ;;  %v542_v20 = vpop.permute.xlu0 %541 }
 0x103   : > { %vm546_vm2 = vcmp.eq.s32.totalorder %v1568_v24, %v542_v20  ;;  %vm680_vm6 = vcmp.eq.s32.totalorder %v1568_v24, %v676_v19  ;;  %vm681_vm7 = vcmp.eq.s32.totalorder %v537_v40, %v676_v19 }
 0x108   : > { %v679_v22 = vpop.permute.xlu1 %678 }
 0x109   : > { %v545_v23 = vpop.permute.xlu0 %544  ;;  %vm682_vm8 = vcmp.eq.s32.totalorder %v1568_v24, %v679_v22  ;;  %vm683_vm9 = vcmp.eq.s32.totalorder %v537_v40, %v679_v22 }
 0x10a   : > { %vm547_vm4 = vcmp.eq.s32.totalorder %v1568_v24, %v545_v23 }
 0x10d   : > { %v587_v25 = vpop.permute.xlu1 %586 }
 0x10e   : > { %v584_v26 = vpop.permute.xlu0 %583  ;;  %vm589_vm5 = vcmp.eq.s32.totalorder %v1568_v24, %v587_v25 }
 0x10f   : > { %vm588_vm3 = vcmp.eq.s32.totalorder %v1568_v24, %v584_v26 }
 0x112   : > { %v662_v49 = vpop.permute.xlu1 %661 }
 0x113   : > { %v665_v55 = vpop.permute.xlu0 %664  ;;  %vm666_vm10 = vcmp.eq.s32.totalorder %v1568_v24, %v662_v49 }
 0x114   : > { %vm667_vm11 = vcmp.eq.s32.totalorder %v1568_v24, %v665_v55 }
 0x15a   : > { %v392_v27 = vpop.f32.mrb[0].mxu0  ;;  %v485_v28 = vpop.f32.mrb[0].mxu1 }
 0x15b   : > { %v1572_v29 = vpop.f32.mrb[1].mxu0  ;;  %v1574_v30 = vpop.f32.mrb[1].mxu1  ;;  %v548_v31 = vsel %vm546_vm2, %v392_v27, -inf  ;;  %v1578_v32 = vadd.f32 %v485_v28, %v392_v27  ;;  %v590_v38 = vsel %vm588_vm3, %v485_v28, -inf }
 0x15c   : > { %v1581_v33 = vpop.f32.mrb[2].mxu1  ;;  %550 = vmax.xlane.f32.xlu1 %v548_v31  ;;  %v1583_v34 = vpop.f32.mrb[2].mxu0  ;;  %v684_v45 = vsel %vm680_vm6, %v1574_v30, -inf  ;;  %v668_v56 = vsel %vm666_vm10, %v1572_v29, -inf }
 0x15d   : > { %v1585_v35 = vpop.f32.mrb[3].mxu0  ;;  %v1587_v36 = vpop.f32.mrb[3].mxu1  ;;  %v549_v37 = vsel %vm547_vm4, %v1583_v34, -inf  ;;  %v1594_v39 = vadd.f32 %v1581_v33, %v1583_v34  ;;  %v591_v41 = vsel %vm589_vm5, %v1581_v33, -inf  ;;  %v626_v44 = vsel %vm546_vm2, %v1578_v32, -inf }
 0x15e   : > { %552 = vmax.xlane.f32.xlu0 %v549_v37  ;;  %v686_v50 = vsel %vm682_vm8, %v1587_v36, -inf  ;;  %v669_v57 = vsel %vm667_vm11, %v1585_v35, -inf }
 0x15f   : > { %v627_v52 = vsel %vm547_vm4, %v1594_v39, -inf }
 0x160   : > { %592 = vmax.xlane.f32.xlu1 %v590_v38 }
 0x162   : > { %594 = vmax.xlane.f32.xlu0 %v591_v41  ;;  %v1601_v42 = vpop.f32.mrb[4].mxu0 }
 0x163   : > { %v1021_v43 = vpop.f32.mrb[5].mxu0  ;;  %v685_v46 = vsel %vm681_vm7, %v1601_v42, -inf }
 0x164   : > { %628 = vmax.xlane.f32.xlu1 %v626_v44  ;;  %v1608_v47 = vpop.f32.mrb[6].mxu0  ;;  %v688_v48 = vmax.f32 %v684_v45, %v685_v46 }
 0x165   : > { %v1022_v51 = vpop.f32.mrb[7].mxu0  ;;  %v687_v53 = vsel %vm683_vm9, %v1608_v47, -inf }
 0x166   : > { %630 = vmax.xlane.f32.xlu0 %v627_v52  ;;  %v691_v54 = vmax.f32 %v686_v50, %v687_v53 }
 0x168   : > { %689 = vmax.xlane.f32.xlu1 %v688_v48 }
 0x16a   : > { %692 = vmax.xlane.f32.xlu0 %v691_v54 }
 0x16c   : > { %670 = vmax.xlane.f32.xlu1 %v668_v56 }
 0x16e   : > { %672 = vmax.xlane.f32.xlu0 %v669_v57 }
 0x1e9   : > { %v551_v58 = vpop.xlane.xlu1 %550 }
 0x1ea   : > { %vm554_vm12 = vcmp.gt.f32.partialorder %v392_v27, %v551_v58 }
 0x1eb   : > { %v556_v59 = vsel %vm554_vm12, 1, %v1291_v0  ;;  %v553_v60 = vpop.xlane.xlu0 %552 }
 0x1ec   : > { %v558_v61 = vand.u32 65535, %v556_v59  ;;  %v559_v62 = vshrl.u32 %v556_v59, 16  ;;  %vm555_vm14 = vcmp.gt.f32.partialorder %v1583_v34, %v553_v60 }
 0x1ed   : > { %v593_v63 = vpop.xlane.xlu1 %592  ;;  %v557_v12 = vsel %vm555_vm14, 1, %v1291_v0  ;;  %vm818_vm14 = vcmp.eq.s32.totalorder %v1568_v24, 0 }
 0x1ee   : > { %vm596_vm13 = vcmp.gt.f32.partialorder %v485_v28, %v593_v63  ;;  %v560_v1 = vcvt.s32.f32 %v558_v61  ;;  %v561_v2 = vcvt.s32.f32 %v559_v62  ;;  %v570_v15 = vand.u32 65535, %v557_v12 }
 0x1ef   : > { %v598_v3 = vsel %vm596_vm13, 1, %v1291_v0  ;;  %v595_v4 = vpop.xlane.xlu0 %594  ;;  %v571_v25 = vshrl.u32 %v557_v12, 16 }
 0x1f0   : > { %562 = vadd.xlane.f32.xlu1 %v560_v1  ;;  %564 = vadd.xlane.f32.xlu0 %v561_v2  ;;  %v600_v5 = vand.u32 65535, %v598_v3  ;;  %v601_v6 = vshrl.u32 %v598_v3, 16  ;;  %vm597_vm15 = vcmp.gt.f32.partialorder %v1581_v33, %v595_v4  ;;  %v572_v38 = vcvt.s32.f32 %v570_v15 }
 0x1f1   : > { %v629_v7 = vpop.xlane.xlu1 %628  ;;  %v599_v21 = vsel %vm597_vm15, 1, %v1291_v0  ;;  %v573_v44 = vcvt.s32.f32 %v571_v25  ;;  %vm821_vm15 = vcmp.eq.s32.totalorder %v1568_v24, 1 }
 0x1f2   : > { %v602_v8 = vcvt.s32.f32 %v600_v5  ;;  %v603_v9 = vcvt.s32.f32 %v601_v6  ;;  %vm632_vm9 = vcmp.gt.f32.partialorder %v1578_v32, %v629_v7  ;;  %v612_v40 = vand.u32 65535, %v599_v21 }
 0x1f3   : > { %v1622_v10 = vpop.xlane.xlu0 %630  ;;  %v634_v43 = vsel %vm632_vm9, 1, %v1291_v0  ;;  %v613_v45 = vshrl.u32 %v599_v21, 16 }
 0x1f4   : > { %604 = vadd.xlane.f32.xlu1 %v602_v8  ;;  %606 = vadd.xlane.f32.xlu0 %v603_v9  ;;  %v614_v46 = vcvt.s32.f32 %v612_v40  ;;  %v637_v48 = vshrl.u32 %v634_v43, 16  ;;  %vm633_vm11 = vcmp.gt.f32.partialorder %v1594_v39, %v1622_v10 }
 0x1f5   : > { %v1624_v11 = vpop.xlane.xlu1 %689  ;;  %v615_v32 = vcvt.s32.f32 %v613_v45  ;;  %v635_v56 = vsel %vm633_vm11, 1, %v1291_v0 }
 0x1f6   : > { %vm750_vm0 = vcmp.gt.f32.partialorder %v1574_v30, %v1624_v11  ;;  %vm751_vm1 = vcmp.gt.f32.partialorder %v1601_v42, %v1624_v11  ;;  %v639_v52 = vcvt.s32.f32 %v637_v48  ;;  %vm722_vm12 = vcmp.gt.f32.partialorder %v1572_v29, %v1624_v11 }
 0x1f7   : > { %v1627_v13 = vpop.xlane.xlu0 %692  ;;  %v754_v22 = vsel %vm750_vm0, 1, %v1291_v0  ;;  %v755_v26 = vsel %vm751_vm1, 1, %v1291_v0  ;;  %v648_v60 = vand.u32 65535, %v635_v56  ;;  %v649_v62 = vshrl.u32 %v635_v56, 16 }
 0x1f8   : > { %vm752_vm5 = vcmp.gt.f32.partialorder %v1587_v36, %v1627_v13  ;;  %vm753_vm6 = vcmp.gt.f32.partialorder %v1608_v47, %v1627_v13  ;;  %v724_v63 = vsel %vm722_vm12, 1, %v1291_v0  ;;  %vm723_vm13 = vcmp.gt.f32.partialorder %v1585_v35, %v1627_v13 }
 0x1f9   : > { %v671_v14 = vpop.xlane.xlu1 %670  ;;  %v756_v27 = vsel %vm752_vm5, 1, %v1291_v0  ;;  %v757_v34 = vsel %vm753_vm6, 1, %v1291_v0  ;;  %v650_v39 = vcvt.s32.f32 %v648_v60  ;;  %v726_v1 = vand.u32 65535, %v724_v63 }
 0x1fa   : > { %vm694_vm2 = vcmp.gt.f32.partialorder %v1572_v29, %v671_v14  ;;  %vm784_vm3 = vcmp.gt.f32.partialorder %v1574_v30, %v671_v14  ;;  %vm785_vm4 = vcmp.gt.f32.partialorder %v1601_v42, %v671_v14  ;;  %v758_v30 = vadd.s32 %v755_v26, %v754_v22 }
 0x1fb   : > { %v788_v16 = vsel %vm784_vm3, 1, %v1291_v0  ;;  %v789_v17 = vsel %vm785_vm4, 1, %v1291_v0  ;;  %v673_v18 = vpop.xlane.xlu0 %672  ;;  %v696_v19 = vsel %vm694_vm2, 1, %v1291_v0  ;;  %v1662_v41 = vadd.s32 %v757_v34, %v756_v27 }
 0x1fc   : > { %vm786_vm7 = vcmp.gt.f32.partialorder %v1587_v36, %v673_v18  ;;  %vm787_vm8 = vcmp.gt.f32.partialorder %v1608_v47, %v673_v18  ;;  %v698_v20 = vand.u32 65535, %v696_v19  ;;  %v699_v23 = vshrl.u32 %v696_v19, 16 }
 0x1fd   : > { %v792_v31 = vadd.s32 %v789_v17, %v788_v16  ;;  %v790_v33 = vsel %vm786_vm7, 1, %v1291_v0  ;;  %v791_v36 = vsel %vm787_vm8, 1, %v1291_v0  ;;  %vm695_vm10 = vcmp.gt.f32.partialorder %v1585_v35, %v673_v18 }
 0x1fe   : > { %v700_v28 = vcvt.s32.f32 %v698_v20  ;;  %v701_v37 = vcvt.s32.f32 %v699_v23  ;;  %v1664_v42 = vadd.s32 %v791_v36, %v790_v33  ;;  %v636_v47 = vand.u32 65535, %v634_v43 }
 0x1ff   : > { %v697_v49 = vsel %vm695_vm10, 1, %v1291_v0  ;;  %v793_v55 = vand.u32 65535, %v792_v31  ;;  %v794_v58 = vshrl.u32 %v792_v31, 16  ;;  %v651_v2 = vcvt.s32.f32 %v649_v62 }
 0x200   : > { %702 = vadd.xlane.f32.xlu1 %v700_v28  ;;  %704 = vadd.xlane.f32.xlu0 %v701_v37  ;;  %v638_v50 = vcvt.s32.f32 %v636_v47  ;;  %v710_v51 = vand.u32 65535, %v697_v49  ;;  %v711_v53 = vshrl.u32 %v697_v49, 16  ;;  %v727_v3 = vshrl.u32 %v724_v63, 16 }
 0x201   : > { %v795_v59 = vcvt.s32.f32 %v793_v55  ;;  %v796_v61 = vcvt.s32.f32 %v794_v58  ;;  %v725_v4 = vsel %vm723_vm13, 1, %v1291_v0  ;;  %v728_v29 = vcvt.s32.f32 %v726_v1 }
 0x202   : > { %v712_v54 = vcvt.s32.f32 %v710_v51  ;;  %v713_v57 = vcvt.s32.f32 %v711_v53  ;;  %v738_v5 = vand.u32 65535, %v725_v4  ;;  %v729_v6 = vcvt.s32.f32 %v727_v3 }
 0x203   : > { %v739_v7 = vshrl.u32 %v725_v4, 16  ;;  %v759_v9 = vand.u32 65535, %v758_v30  ;;  %v760_v35 = vshrl.u32 %v758_v30, 16  ;;  %v772_v12 = vand.u32 65535, %v1662_v41 }
 0x204   : > { %574 = vadd.xlane.f32.xlu1 %v572_v38  ;;  %576 = vadd.xlane.f32.xlu0 %v573_v44  ;;  %v740_v8 = vcvt.s32.f32 %v738_v5  ;;  %v773_v0 = vshrl.u32 %v1662_v41, 16  ;;  %v806_v15 = vand.u32 65535, %v1664_v42  ;;  %v807_v17 = vshrl.u32 %v1664_v42, 16 }
 0x205   : > { %v741_v10 = vcvt.s32.f32 %v739_v7  ;;  %v761_v11 = vcvt.s32.f32 %v759_v9  ;;  %v762_v13 = vcvt.s32.f32 %v760_v35  ;;  %v774_v14 = vcvt.s32.f32 %v772_v12 }
 0x206   : > { %v775_v16 = vcvt.s32.f32 %v773_v0  ;;  %v808_v18 = vcvt.s32.f32 %v806_v15  ;;  %v809_v19 = vcvt.s32.f32 %v807_v17  ;;  %vm824_vm0 = vcmp.eq.s32.totalorder %v1568_v24, 2 }
 0x207   : > { %vm827_vm1 = vcmp.eq.s32.totalorder %v1568_v24, 3  ;;  %vm830_vm2 = vcmp.eq.s32.totalorder %v1568_v24, 4  ;;  %vm833_vm3 = vcmp.eq.s32.totalorder %v1568_v24, 5  ;;  %vm836_vm4 = vcmp.eq.s32.totalorder %v1568_v24, 6 }
 0x208   : > { %616 = vadd.xlane.f32.xlu1 %v614_v46  ;;  %618 = vadd.xlane.f32.xlu0 %v615_v32 }
 0x20c   : > { %640 = vadd.xlane.f32.xlu1 %v638_v50  ;;  %642 = vadd.xlane.f32.xlu0 %v639_v52 }
 0x210   : > { %714 = vadd.xlane.f32.xlu1 %v712_v54  ;;  %716 = vadd.xlane.f32.xlu0 %v713_v57 }
 0x214   : > { %797 = vadd.xlane.f32.xlu1 %v795_v59  ;;  %799 = vadd.xlane.f32.xlu0 %v796_v61 }
 0x218   : > { %652 = vadd.xlane.f32.xlu1 %v650_v39  ;;  %654 = vadd.xlane.f32.xlu0 %v651_v2 }
 0x21c   : > { %730 = vadd.xlane.f32.xlu1 %v728_v29  ;;  %732 = vadd.xlane.f32.xlu0 %v729_v6 }
 0x220   : > { %742 = vadd.xlane.f32.xlu1 %v740_v8  ;;  %744 = vadd.xlane.f32.xlu0 %v741_v10 }
 0x224   : > { %763 = vadd.xlane.f32.xlu1 %v761_v11  ;;  %765 = vadd.xlane.f32.xlu0 %v762_v13 }
 0x228   : > { %776 = vadd.xlane.f32.xlu1 %v774_v14  ;;  %778 = vadd.xlane.f32.xlu0 %v775_v16 }
 0x22c   : > { %810 = vadd.xlane.f32.xlu1 %v808_v18  ;;  %812 = vadd.xlane.f32.xlu0 %v809_v19 }
 0x27d   : > { %v563_v20 = vpop.xlane.xlu1 %562  ;;  %v565_v21 = vpop.xlane.xlu0 %564 }
 0x27e   : > { %v567_v45 = vcvt.f32.s32 %v565_v21  ;;  %v566_v54 = vcvt.f32.s32 %v563_v20 }
 0x280   : > { %v568_v51 = vshll.u32 %v567_v45, 16 }
 0x281   : > { %v605_v22 = vpop.xlane.xlu1 %604  ;;  %v607_v23 = vpop.xlane.xlu0 %606 }
 0x282   : > { %v609_v49 = vcvt.f32.s32 %v607_v23  ;;  %v569_v60 = vadd.s32 %v568_v51, %v566_v54  ;;  %v608_v39 = vcvt.f32.s32 %v605_v22 }
 0x284   : > { %v610_v57 = vshll.u32 %v609_v49, 16 }
 0x286   : > { %v611_v7 = vadd.s32 %v610_v57, %v608_v39 }
 0x28d   : > { %v703_v25 = vpop.xlane.xlu1 %702  ;;  %v705_v26 = vpop.xlane.xlu0 %704 }
 0x28e   : > { %v707_v52 = vcvt.f32.s32 %v705_v26  ;;  %v706_v3 = vcvt.f32.s32 %v703_v25 }
 0x290   : > { %v708_v61 = vshll.u32 %v707_v52, 16 }
 0x291   : > { %v1682_v27 = vpop.xlane.xlu1 %574  ;;  %v577_v28 = vpop.xlane.xlu0 %576 }
 0x292   : > { %v579_v58 = vcvt.f32.s32 %v577_v28  ;;  %v709_v10 = vadd.s32 %v708_v61, %v706_v3  ;;  %v578_v35 = vcvt.f32.s32 %v1682_v27 }
 0x294   : > { %v580_v8 = vshll.u32 %v579_v58, 16 }
 0x295   : > { %v1684_v31 = vpop.xlane.xlu1 %616  ;;  %v619_v34 = vpop.xlane.xlu0 %618 }
 0x296   : > { %v621_v4 = vcvt.f32.s32 %v619_v34  ;;  %v620_v17 = vcvt.f32.s32 %v1684_v31  ;;  %v581_v22 = vadd.s32 %v580_v8, %v578_v35 }
 0x298   : > { %v622_v18 = vshll.u32 %v621_v4, 16 }
 0x299   : > { %v641_v33 = vpop.xlane.xlu1 %640  ;;  %v643_v36 = vpop.xlane.xlu0 %642 }
 0x29a   : > { %v645_v41 = vcvt.f32.s32 %v643_v36  ;;  %v644_v46 = vcvt.f32.s32 %v641_v33 }
 0x29c   : > { %v646_v44 = vshll.u32 %v645_v41, 16 }
 0x29d   : > { %v1686_v37 = vpop.xlane.xlu1 %714  ;;  %v1688_v30 = vpop.xlane.xlu0 %716 }
 0x29e   : > { %v647_v50 = vadd.s32 %v646_v44, %v644_v46  ;;  %v719_v11 = vcvt.f32.s32 %v1688_v30  ;;  %v718_v45 = vcvt.f32.s32 %v1686_v37 }
 0x2a0   : > { %v819_v59 = vsel %vm818_vm14, %v647_v50, 0  ;;  %v720_v27 = vshll.u32 %v719_v11, 16 }
 0x2a1   : > { %v1690_v38 = vpop.xlane.xlu1 %797  ;;  %v800_v40 = vpop.xlane.xlu0 %799  ;;  %v822_v29 = vsel %vm821_vm15, %v569_v60, %v819_v59 }
 0x2a2   : > { %v802_v62 = vcvt.f32.s32 %v800_v40  ;;  %v825_v13 = vsel %vm824_vm0, %v611_v7, %v822_v29  ;;  %v801_v19 = vcvt.f32.s32 %v1690_v38  ;;  %v623_v40 = vadd.s32 %v622_v18, %v620_v17 }
 0x2a3   : > { %v828_v33 = vsel %vm827_vm1, %v709_v10, %v825_v13  ;;  %v721_v50 = vadd.s32 %v720_v27, %v718_v45 }
 0x2a4   : > { %v803_v12 = vshll.u32 %v802_v62, 16 }
 0x2a5   : > { %v653_v42 = vpop.xlane.xlu1 %652  ;;  %v655_v43 = vpop.xlane.xlu0 %654 }
 0x2a6   : > { %v657_v32 = vcvt.f32.s32 %v655_v43  ;;  %v656_v63 = vcvt.f32.s32 %v653_v42  ;;  %v804_v28 = vadd.s32 %v803_v12, %v801_v19 }
 0x2a8   : > { %v658_v55 = vshll.u32 %v657_v32, 16 }
 0x2a9   : > { %v731_v47 = vpop.xlane.xlu1 %730  ;;  %v733_v48 = vpop.xlane.xlu0 %732 }
 0x2aa   : > { %v735_v1 = vcvt.f32.s32 %v733_v48  ;;  %v659_v5 = vadd.s32 %v658_v55, %v656_v63  ;;  %v734_v23 = vcvt.f32.s32 %v731_v47 }
 0x2ac   : > { %v736_v0 = vshll.u32 %v735_v1, 16  ;;  %v820_v20 = vsel %vm818_vm14, %v659_v5, 0 }
 0x2ad   : > { %v1693_v53 = vpop.xlane.xlu1 %742  ;;  %v745_v56 = vpop.xlane.xlu0 %744  ;;  %v823_v31 = vsel %vm821_vm15, %v581_v22, %v820_v20 }
 0x2ae   : > { %v747_v34 = vcvt.f32.s32 %v745_v56  ;;  %v737_v36 = vadd.s32 %v736_v0, %v734_v23  ;;  %v826_v32 = vsel %vm824_vm0, %v623_v40, %v823_v31  ;;  %v746_v37 = vcvt.f32.s32 %v1693_v53 }
 0x2af   : > { %v829_v54 = vsel %vm827_vm1, %v721_v50, %v826_v32 }
 0x2b0   : > { %v748_v48 = vshll.u32 %v747_v34, 16 }
 0x2b1   : > { %v764_v2 = vpop.xlane.xlu1 %763  ;;  %v766_v6 = vpop.xlane.xlu0 %765 }
 0x2b2   : > { %v768_v9 = vcvt.f32.s32 %v766_v6  ;;  %v767_v14 = vcvt.f32.s32 %v764_v2  ;;  %v749_v56 = vadd.s32 %v748_v48, %v746_v37 }
 0x2b4   : > { %v769_v15 = vshll.u32 %v768_v9, 16 }
 0x2b5   : > { %v777_v16 = vpop.xlane.xlu1 %776  ;;  %v779_v21 = vpop.xlane.xlu0 %778 }
 0x2b6   : > { %v770_v25 = vadd.s32 %v769_v15, %v767_v14  ;;  %v781_v26 = vcvt.f32.s32 %v779_v21  ;;  %v780_v41 = vcvt.f32.s32 %v777_v16 }
 0x2b8   : > { %v831_v30 = vsel %vm830_vm2, %v770_v25, %v828_v33  ;;  %v782_v38 = vshll.u32 %v781_v26, 16 }
 0x2b9   : > { %v811_v42 = vpop.xlane.xlu1 %810  ;;  %v834_v43 = vsel %vm833_vm3, %v804_v28, %v831_v30  ;;  %v813_v44 = vpop.xlane.xlu0 %812 }
 0x2ba   : > { %v837_v46 = vsel %vm836_vm4, %v737_v36, %v834_v43  ;;  %v815_v47 = vcvt.f32.s32 %v813_v44  ;;  %v783_v49 = vadd.s32 %v782_v38, %v780_v41  ;;  %v814_v51 = vcvt.f32.s32 %v811_v42 }
 0x2bb   : > { %839 = vst [vmem:[%s312_s24] sm:$0xff] %v837_v46 }
 0x2bc   : > { %v816_v52 = vshll.u32 %v815_v47, 16  ;;  %v832_v57 = vsel %vm830_vm2, %v783_v49, %v829_v54 }
 0x2be   : > { %v817_v55 = vadd.s32 %v816_v52, %v814_v51 }
 0x2c0   : > { %v835_v53 = vsel %vm833_vm3, %v817_v55, %v832_v57 }
 0x2c1   : > { %v838_v58 = vsel %vm836_vm4, %v749_v56, %v835_v53 }
 0x2c2   : > { %840 = vst [vmem:[%s312_s24 + $0x8] sm:$0xff] %v838_v58 }
 0x2c3   : > { %1221 = shalt.err (!%p1218_p8)
}
 0x2c4   : > { %s1222_s28 = scalar_lea.hbm %s1736_s29, 256  ;;  %s1226_s26 = scalar_lea.hbm %s1791_s5, 512 }
 0x2c5   : > { %p1223_p10 = scmp.ne.s32.totalorder %s1736_s29, %s1222_s28  ;;  %p1227_p11 = scmp.lt.u32.totalorder %s1736_s29, %s1791_s5 }
 0x2c6   : > { %p1228_p13 = scmp.lt.u32.totalorder %s1226_s26, %s1222_s28  ;;  %p1230_p7 = scmp.lt.u32.totalorder %s1222_s28, %s1736_s29 }
 0x2c7   : > { %p1224_p0 = pnand %p1223_p10, %p1421_p12 }
 0x2c8   : > { %p1229_p3 = por %p1228_p13, %p1227_p11 }
 0x2c9   : > { %p1225_p4 = pneg %p1224_p0 }
 0x2ca   : > { %p1231_p9 = por %p1230_p7, %p1229_p3 }
 0x2cc   : > { %p1232_p1 = pnand %p1231_p9, %p1225_p4 }
 0x2ce   : > { %1235 = shalt.err (!%p1232_p1)
}
 0x2cf   : > { %s1298_s14 = smov 128   ;;  %s1299_s24 = smov 8  }
 0x2d0   : > { %1031 = dma.vmem_to_hbm [thread:$0]  (%p1421_p12), %s1738_s10, 256, %s1736_s29, %s842_s22, %s1298_s14, %s1298_s14, %s1299_s24  }
 0x2d1 PF: > { %s870_s27 = sand.u32 1, %s1270_s18   ;;  %p1810_p5 = scmp.ne.s32.totalorder %s1798_s25, 0 }
 0x2d2   : > { %p1811_p2 = scmp.ge.s32.totalorder %s1282_s21, 2  ;;  %s871_s17 = scalar_lea.sflag [#allocation4], %s870_s27 }
 0x2d4   : > { %p1045_p6 = pnand %p1811_p2, %p1810_p5 }
 0x2d6   : > { %1265 = dma.done.wait (!%p1045_p6), %s871_s17, 256  }
 0x2d7   : > { %1267 = vsyncadd (!%p1045_p6), %s871_s17, 4294967040  ;;  %p21_p8 = scmp.ge.s32.totalorder %s1386_s30, 4   ;;  %s1812_s18 = smov %s1274_s19 }
 0x2d8   : > { %s1813_s19 = smov %s1278_s20  ;;  %s1814_s20 = smov %s1417_s8 }
 0x2d9   : > { %s1815_s21 = smov %s1386_s30  ;;  %23 = sbr.rel (!%p21_p8) target bundleno = 10 (0xa), region = 105 }
 0x2e0   :  { %876 = vsyncpa [#allocation3], 1 }
 0x2e1   :  { %878 = vsyncpa [#allocation3 + $0x1], 1 }
 0x2e2   :  { %879 = vsyncpa [#allocation6], 1 }
 0x2e3   :  { %881 = vsyncpa [#allocation6 + $0x1], 1 }
 0x2e4   :  { %882 = vsyncpa [#allocation4], 1 }
 0x2e5   :  { %884 = vsyncpa [#allocation4 + $0x1], 1 }

</bundles_post_ra>
